<compile_context>
chip_gen: v7x
topology: tpu7x:2x2x1
jax: 0.10.0
libtpu: 0.0.40
codegen_flags: <defaults>
</compile_context>

<pallas_src>
import jax
import jax.numpy as jnp
from jax import lax
from jax.experimental import pallas as pl
from jax.experimental.pallas import tpu as pltpu

# ----------------------------- small config -----------------------------
VOCAB = 128
HIDDEN = 64
N_HEADS = 4
N_KV_HEADS = 2                        # GQA
HEAD_DIM = HIDDEN // N_HEADS          # 16
INTERMEDIATE = 128
N_LAYERS = 2
ROPE_PCT = 0.25                       # StableLM partial rotary factor
ROTARY_DIMS = int(HEAD_DIM * ROPE_PCT)  # 4
ROPE_THETA = 10000.0
NORM_EPS = 1e-5
SEQ = 8

Q_SIZE = N_HEADS * HEAD_DIM           # 64
KV_SIZE = N_KV_HEADS * HEAD_DIM       # 32
QKV_OUT = Q_SIZE + 2 * KV_SIZE        # 128
GROUP = N_HEADS // N_KV_HEADS         # 2
ROT_HALF = ROTARY_DIMS // 2           # 2
SCALE = HEAD_DIM ** -0.5


# ----------------------------- fused Pallas kernel -----------------------------
def stablelm_fused_kernel(
    x_ref, cos_ref, sin_lo_ref, sin_hi_ref,
    ln1_g_ref, ln1_b_ref, qkv_w_ref, qkv_b_ref, o_w_ref,
    ln2_g_ref, ln2_b_ref, gate_up_w_ref, down_w_ref,
    fin_g_ref, fin_b_ref,
    out_ref,
):
    """Entire N_LAYERS StableLM forward (post-embedding) with weights VMEM-resident."""
    f32 = jnp.float32
    h = x_ref[...].astype(f32)        # (T, H) residual stream
    cos = cos_ref[...]                # (T, QKV_OUT): cos on rotary q/k lanes, 1 elsewhere
    sin_lo = sin_lo_ref[...]          # -sin on first-half rotary lanes, 0 elsewhere
    sin_hi = sin_hi_ref[...]          # +sin on second-half rotary lanes, 0 elsewhere
    T = h.shape[0]

    # Causal additive mask, built once (hoisted out of the head / layer loops).
    row = lax.broadcasted_iota(jnp.int32, (T, T), 0)
    col = lax.broadcasted_iota(jnp.int32, (T, T), 1)
    neg_mask = jnp.where(col <= row, 0.0, -1e30).astype(f32)

    def layer_norm(v, g, b):
        mean = jnp.mean(v, axis=-1, keepdims=True)
        vc = v - mean
        var = jnp.mean(vc * vc, axis=-1, keepdims=True)
        return vc * lax.rsqrt(var + NORM_EPS) * g + b

    for l in range(N_LAYERS):         # static unroll; per-layer weights indexed statically
        # ---------------- self-attention block ----------------
        residual = h
        hn = layer_norm(h, ln1_g_ref[l], ln1_b_ref[l])
        qkv = jnp.dot(hn, qkv_w_ref[l], preferred_element_type=f32) + qkv_b_ref[l]  # (T,128)

        # NeoX partial RoPE on the whole packed q|k|v slab in one shot:
        #   roped = qkv*cos + qkv[j+half]*(-sin on lanes 0..half-1)
        #                   + qkv[j-half]*(+sin on lanes half..rot-1)
        # Sign / rotary-vs-pass-through / v-lane masking all live in the precomputed
        # tables, so two XLU lane rolls + elementwise VPU math handle every head at once.
        shifted_hi = pltpu.roll(qkv, QKV_OUT - ROT_HALF, 1)   # lane j -> qkv[j + half]
        shifted_lo = pltpu.roll(qkv, ROT_HALF, 1)             # lane j -> qkv[j - half]
        roped = qkv * cos + shifted_hi * sin_lo + shifted_lo * sin_hi

        o_w = o_w_ref[l]                                      # (NH*HD, H)
        attn_out = jnp.zeros((T, HIDDEN), f32)
        for hd in range(N_HEADS):                             # static unroll over heads
            kv = hd // GROUP                                  # GQA: shared kv head
            q_h = roped[:, hd * HEAD_DIM:(hd + 1) * HEAD_DIM]
            k_h = roped[:, Q_SIZE + kv * HEAD_DIM:Q_SIZE + (kv + 1) * HEAD_DIM]
            v_h = roped[:, Q_SIZE + KV_SIZE + kv * HEAD_DIM:
                           Q_SIZE + KV_SIZE + (kv + 1) * HEAD_DIM]
            s = lax.dot_general(q_h, k_h, (((1,), (1,)), ((), ())),
                                preferred_element_type=f32) * SCALE + neg_mask
            m = jnp.max(s, axis=-1, keepdims=True)
            p = jnp.exp(s - m)
            p = p * pl.reciprocal(jnp.sum(p, axis=-1, keepdims=True), approx=True)
            ctx = jnp.dot(p, v_h, preferred_element_type=f32)                # (T, HD)
            # Fold this head's contribution through its o_proj row block: avoids a
            # sub-128-lane concat of head outputs before the projection.
            attn_out = attn_out + jnp.dot(
                ctx, o_w[hd * HEAD_DIM:(hd + 1) * HEAD_DIM, :],
                preferred_element_type=f32)
        h = residual + attn_out

        # ---------------- MLP block ----------------
        residual = h
        hn = layer_norm(h, ln2_g_ref[l], ln2_b_ref[l])
        gu = jnp.dot(hn, gate_up_w_ref[l], preferred_element_type=f32)       # (T, 2*I)
        gate = gu[:, :INTERMEDIATE]
        up = gu[:, INTERMEDIATE:]
        act = gate * jax.nn.sigmoid(gate) * up                               # SiluAndMul
        h = residual + jnp.dot(act, down_w_ref[l], preferred_element_type=f32)

    out_ref[...] = layer_norm(h, fin_g_ref[...], fin_b_ref[...]).astype(out_ref.dtype)


# ----------------------------- glue (plain JAX) -----------------------------
def rope_tables_packed(positions):
    """cos / -sin / +sin tables packed over the (q|k|v) lane layout of the qkv slab."""
    T = positions.shape[0]
    inv_freq = 1.0 / (ROPE_THETA ** (jnp.arange(0, ROTARY_DIMS, 2, dtype=jnp.float32)
                                     / ROTARY_DIMS))
    freqs = positions.astype(jnp.float32)[:, None] * inv_freq[None, :]       # (T, half)
    cos = jnp.cos(freqs)
    sin = jnp.sin(freqs)
    pad = HEAD_DIM - ROTARY_DIMS
    cos_head = jnp.concatenate([cos, cos, jnp.ones((T, pad), jnp.float32)], -1)
    sin_lo_head = jnp.concatenate([-sin, jnp.zeros((T, HEAD_DIM - ROT_HALF), jnp.float32)], -1)
    sin_hi_head = jnp.concatenate([jnp.zeros((T, ROT_HALF), jnp.float32), sin,
                                   jnp.zeros((T, pad), jnp.float32)], -1)
    ones_head = jnp.ones((T, HEAD_DIM), jnp.float32)
    zeros_head = jnp.zeros((T, HEAD_DIM), jnp.float32)
    n_rope_heads = N_HEADS + N_KV_HEADS          # q and k heads get RoPE; v passes through
    cos_slab = jnp.concatenate([cos_head] * n_rope_heads + [ones_head] * N_KV_HEADS, -1)
    sin_lo_slab = jnp.concatenate([sin_lo_head] * n_rope_heads + [zeros_head] * N_KV_HEADS, -1)
    sin_hi_slab = jnp.concatenate([sin_hi_head] * n_rope_heads + [zeros_head] * N_KV_HEADS, -1)
    return cos_slab, sin_lo_slab, sin_hi_slab


def init_params(key):
    def normal(k, shape, scale=0.02):
        return (scale * jax.random.normal(k, shape)).astype(jnp.float32)

    k_embed, k_fin, *k_layers = jax.random.split(key, 2 + N_LAYERS)
    per = {"ln1_g": [], "ln1_b": [], "qkv_w": [], "qkv_b": [], "o_w": [],
           "ln2_g": [], "ln2_b": [], "gate_up_w": [], "down_w": []}
    for lk in k_layers:
        s = jax.random.split(lk, 9)
        per["ln1_g"].append(1.0 + normal(s[0], (1, HIDDEN), 0.1))
        per["ln1_b"].append(normal(s[1], (1, HIDDEN), 0.1))
        per["qkv_w"].append(normal(s[2], (HIDDEN, QKV_OUT)))      # use_qkv_bias=True
        per["qkv_b"].append(normal(s[3], (1, QKV_OUT)))
        per["o_w"].append(normal(s[4], (N_HEADS * HEAD_DIM, HIDDEN)))
        per["ln2_g"].append(1.0 + normal(s[5], (1, HIDDEN), 0.1))
        per["ln2_b"].append(normal(s[6], (1, HIDDEN), 0.1))
        per["gate_up_w"].append(normal(s[7], (HIDDEN, 2 * INTERMEDIATE)))
        per["down_w"].append(normal(s[8], (INTERMEDIATE, HIDDEN)))
    params = {k: jnp.stack(v, axis=0) for k, v in per.items()}    # stacked over layers
    params["embed"] = normal(k_embed, (VOCAB, HIDDEN), 0.5)
    kg, kb = jax.random.split(k_fin)
    params["final_ln_g"] = 1.0 + normal(kg, (1, HIDDEN), 0.1)
    params["final_ln_b"] = normal(kb, (1, HIDDEN), 0.1)
    return params


def stablelm_forward(params, input_ids, positions):
    # TODO(synk): vLLM paged KV-cache / AttentionMetadata is not modeled; this is a
    # single-sequence causal prefill.  Embedding gather stays in plain JAX glue.
    h = jnp.take(params["embed"], input_ids, axis=0)               # (T, H)
    cos, sin_lo, sin_hi = rope_tables_packed(positions)
    return pl.pallas_call(
        stablelm_fused_kernel,
        out_shape=jax.ShapeDtypeStruct(h.shape, h.dtype),
    )(h, cos, sin_lo, sin_hi,
      params["ln1_g"], params["ln1_b"], params["qkv_w"], params["qkv_b"], params["o_w"],
      params["ln2_g"], params["ln2_b"], params["gate_up_w"], params["down_w"],
      params["final_ln_g"], params["final_ln_b"])


# ----------------------------- pure-JAX reference -----------------------------
def reference_forward(params, input_ids, positions):
    h = jnp.take(params["embed"], input_ids, axis=0)
    T = h.shape[0]
    inv_freq = 1.0 / (ROPE_THETA ** (jnp.arange(0, ROTARY_DIMS, 2, dtype=jnp.float32)
                                     / ROTARY_DIMS))
    freqs = positions.astype(jnp.float32)[:, None] * inv_freq[None, :]
    cos = jnp.concatenate([jnp.cos(freqs)] * 2, -1)                # (T, ROT)
    sin = jnp.concatenate([jnp.sin(freqs)] * 2, -1)

    def rotate_half(x):
        return jnp.concatenate([-x[..., ROT_HALF:], x[..., :ROT_HALF]], -1)

    def layer_norm(x, g, b):
        m = jnp.mean(x, -1, keepdims=True)
        v = jnp.mean((x - m) ** 2, -1, keepdims=True)
        return (x - m) / jnp.sqrt(v + NORM_EPS) * g + b

    def rope(x):  # x: (T, n_heads, HD)
        xr, xp = x[..., :ROTARY_DIMS], x[..., ROTARY_DIMS:]
        xr = xr * cos[:, None, :] + rotate_half(xr) * sin[:, None, :]
        return jnp.concatenate([xr, xp], -1)

    mask = jnp.tril(jnp.ones((T, T), bool))
    for l in range(N_LAYERS):
        residual = h
        hn = layer_norm(h, params["ln1_g"][l], params["ln1_b"][l])
        qkv = hn @ params["qkv_w"][l] + params["qkv_b"][l]
        q = qkv[:, :Q_SIZE].reshape(T, N_HEADS, HEAD_DIM)
        k = qkv[:, Q_SIZE:Q_SIZE + KV_SIZE].reshape(T, N_KV_HEADS, HEAD_DIM)
        v = qkv[:, Q_SIZE + KV_SIZE:].reshape(T, N_KV_HEADS, HEAD_DIM)
        q, k = rope(q), rope(k)
        k = jnp.repeat(k, GROUP, axis=1)
        v = jnp.repeat(v, GROUP, axis=1)
        s = jnp.einsum("qhd,khd->hqk", q, k) * SCALE
        s = jnp.where(mask[None], s, -1e30)
        p = jax.nn.softmax(s, axis=-1)
        ctx = jnp.einsum("hqk,khd->qhd", p, v).reshape(T, N_HEADS * HEAD_DIM)
        h = residual + ctx @ params["o_w"][l]
        residual = h
        hn = layer_norm(h, params["ln2_g"][l], params["ln2_b"][l])
        gu = hn @ params["gate_up_w"][l]
        gate, up = gu[:, :INTERMEDIATE], gu[:, INTERMEDIATE:]
        h = residual + (gate * jax.nn.sigmoid(gate) * up) @ params["down_w"][l]
    return layer_norm(h, params["final_ln_g"], params["final_ln_b"])


if __name__ == "__main__":
    key = jax.random.PRNGKey(0)
    pkey, ikey = jax.random.split(key)
    params = init_params(pkey)
    input_ids = jax.random.randint(ikey, (SEQ,), 0, VOCAB, dtype=jnp.int32)
    positions = jnp.arange(SEQ, dtype=jnp.int32)

    out = jax.jit(stablelm_forward)(params, input_ids, positions)
    jax.block_until_ready(out)
    assert out.shape == (SEQ, HIDDEN) and out.dtype == jnp.float32

    ref = reference_forward(params, input_ids, positions)
    jax.block_until_ready(ref)
    max_err = float(jnp.max(jnp.abs(out - ref)))
    assert jnp.allclose(out, ref, atol=2e-3, rtol=2e-3), max_err
    print("KERNEL_OK")
</pallas_src>

<mosaic_0001>
module attributes {stable_mosaic.version = 11 : i64} {
  func.func @stablelm_fused_kernel(%arg0: memref<8x64xf32, #tpu.memory_space<vmem>>, %arg1: memref<8x128xf32, #tpu.memory_space<vmem>>, %arg2: memref<8x128xf32, #tpu.memory_space<vmem>>, %arg3: memref<8x128xf32, #tpu.memory_space<vmem>>, %arg4: memref<2x1x64xf32, #tpu.memory_space<vmem>>, %arg5: memref<2x1x64xf32, #tpu.memory_space<vmem>>, %arg6: memref<2x64x128xf32, #tpu.memory_space<vmem>>, %arg7: memref<2x1x128xf32, #tpu.memory_space<vmem>>, %arg8: memref<2x64x64xf32, #tpu.memory_space<vmem>>, %arg9: memref<2x1x64xf32, #tpu.memory_space<vmem>>, %arg10: memref<2x1x64xf32, #tpu.memory_space<vmem>>, %arg11: memref<2x64x256xf32, #tpu.memory_space<vmem>>, %arg12: memref<2x128x64xf32, #tpu.memory_space<vmem>>, %arg13: memref<1x64xf32, #tpu.memory_space<vmem>>, %arg14: memref<1x64xf32, #tpu.memory_space<vmem>>, %arg15: memref<8x64xf32, #tpu.memory_space<vmem>>) attributes {dimension_semantics = [], scalar_prefetch = 0 : i64, scratch_operands = 0 : i64, tpu.core_type = #tpu.core_type<tc>} {
    %c0 = arith.constant 0 : index
    %c0_0 = arith.constant 0 : index
    %0 = vector.load %arg0[%c0, %c0_0] : memref<8x64xf32, #tpu.memory_space<vmem>>, vector<8x64xf32>
    %c0_1 = arith.constant 0 : index
    %c0_2 = arith.constant 0 : index
    %1 = vector.load %arg1[%c0_1, %c0_2] : memref<8x128xf32, #tpu.memory_space<vmem>>, vector<8x128xf32>
    %c0_3 = arith.constant 0 : index
    %c0_4 = arith.constant 0 : index
    %2 = vector.load %arg2[%c0_3, %c0_4] : memref<8x128xf32, #tpu.memory_space<vmem>>, vector<8x128xf32>
    %c0_5 = arith.constant 0 : index
    %c0_6 = arith.constant 0 : index
    %3 = vector.load %arg3[%c0_5, %c0_6] : memref<8x128xf32, #tpu.memory_space<vmem>>, vector<8x128xf32>
    %4 = tpu.iota {dimensions = array<i32: 0>} : vector<8x8xi32>
    %5 = tpu.iota {dimensions = array<i32: 1>} : vector<8x8xi32>
    %6 = arith.cmpi sle, %5, %4 : vector<8x8xi32>
    %cst = arith.constant 0.000000e+00 : f32
    %cst_7 = arith.constant -1.000000e+30 : f32
    %7 = vector.broadcast %cst : f32 to vector<8x8xf32>
    %8 = vector.broadcast %cst_7 : f32 to vector<8x8xf32>
    %9 = arith.select %6, %7, %8 : vector<8x8xi1>, vector<8x8xf32>
    %c0_8 = arith.constant 0 : index
    %c0_9 = arith.constant 0 : index
    %c0_10 = arith.constant 0 : index
    %10 = vector.load %arg4[%c0_8, %c0_9, %c0_10] : memref<2x1x64xf32, #tpu.memory_space<vmem>>, vector<1x1x64xf32>
    %11 = vector.shape_cast %10 : vector<1x1x64xf32> to vector<1x64xf32>
    %c0_11 = arith.constant 0 : index
    %c0_12 = arith.constant 0 : index
    %c0_13 = arith.constant 0 : index
    %12 = vector.load %arg5[%c0_11, %c0_12, %c0_13] : memref<2x1x64xf32, #tpu.memory_space<vmem>>, vector<1x1x64xf32>
    %13 = vector.shape_cast %12 : vector<1x1x64xf32> to vector<1x64xf32>
    %cst_14 = arith.constant dense<0.000000e+00> : vector<8xf32>
    %14 = vector.multi_reduction <add>, %0, %cst_14 [1] : vector<8x64xf32> to vector<8xf32>
    %15 = vector.shape_cast %14 : vector<8xf32> to vector<8x1xf32>
    %cst_15 = arith.constant 6.400000e+01 : f32
    %16 = vector.broadcast %cst_15 : f32 to vector<8x1xf32>
    %17 = arith.divf %15, %16 : vector<8x1xf32>
    %18 = vector.broadcast %17 : vector<8x1xf32> to vector<8x64xf32>
    %19 = arith.subf %0, %18 : vector<8x64xf32>
    %20 = arith.mulf %19, %19 : vector<8x64xf32>
    %cst_16 = arith.constant dense<0.000000e+00> : vector<8xf32>
    %21 = vector.multi_reduction <add>, %20, %cst_16 [1] : vector<8x64xf32> to vector<8xf32>
    %22 = vector.shape_cast %21 : vector<8xf32> to vector<8x1xf32>
    %cst_17 = arith.constant 6.400000e+01 : f32
    %23 = vector.broadcast %cst_17 : f32 to vector<8x1xf32>
    %24 = arith.divf %22, %23 : vector<8x1xf32>
    %cst_18 = arith.constant 9.99999974E-6 : f32
    %25 = vector.broadcast %cst_18 : f32 to vector<8x1xf32>
    %26 = arith.addf %24, %25 : vector<8x1xf32>
    %27 = math.rsqrt %26 : vector<8x1xf32>
    %28 = vector.broadcast %27 : vector<8x1xf32> to vector<8x64xf32>
    %29 = arith.mulf %19, %28 : vector<8x64xf32>
    %30 = vector.broadcast %11 : vector<1x64xf32> to vector<8x64xf32>
    %31 = arith.mulf %29, %30 : vector<8x64xf32>
    %32 = vector.broadcast %13 : vector<1x64xf32> to vector<8x64xf32>
    %33 = arith.addf %31, %32 : vector<8x64xf32>
    %c0_19 = arith.constant 0 : index
    %c0_20 = arith.constant 0 : index
    %c0_21 = arith.constant 0 : index
    %34 = vector.load %arg6[%c0_19, %c0_20, %c0_21] : memref<2x64x128xf32, #tpu.memory_space<vmem>>, vector<1x64x128xf32>
    %35 = vector.shape_cast %34 : vector<1x64x128xf32> to vector<64x128xf32>
    %cst_22 = arith.constant dense<0.000000e+00> : vector<8x128xf32>
    %36 = tpu.matmul %33, %35, %cst_22 {dimension_numbers = #tpu.dot_dimension_numbers<[1], [0], [0], [1], [0, 0, 1, 1], [], []>} : vector<8x64xf32>, vector<64x128xf32>, vector<8x128xf32> -> vector<8x128xf32>
    %c0_23 = arith.constant 0 : index
    %c0_24 = arith.constant 0 : index
    %c0_25 = arith.constant 0 : index
    %37 = vector.load %arg7[%c0_23, %c0_24, %c0_25] : memref<2x1x128xf32, #tpu.memory_space<vmem>>, vector<1x1x128xf32>
    %38 = vector.shape_cast %37 : vector<1x1x128xf32> to vector<1x128xf32>
    %39 = vector.broadcast %38 : vector<1x128xf32> to vector<8x128xf32>
    %40 = arith.addf %36, %39 : vector<8x128xf32>
    %c126_i32 = arith.constant 126 : i32
    %41 = tpu.dynamic_rotate %40 by %c126_i32 dim 1 : vector<8x128xf32>, i32 -> vector<8x128xf32>
    %c2_i32 = arith.constant 2 : i32
    %42 = tpu.dynamic_rotate %40 by %c2_i32 dim 1 : vector<8x128xf32>, i32 -> vector<8x128xf32>
    %43 = arith.mulf %40, %1 : vector<8x128xf32>
    %44 = arith.mulf %41, %2 : vector<8x128xf32>
    %45 = arith.addf %43, %44 : vector<8x128xf32>
    %46 = arith.mulf %42, %3 : vector<8x128xf32>
    %47 = arith.addf %45, %46 : vector<8x128xf32>
    %c0_26 = arith.constant 0 : index
    %c0_27 = arith.constant 0 : index
    %c0_28 = arith.constant 0 : index
    %48 = vector.load %arg8[%c0_26, %c0_27, %c0_28] : memref<2x64x64xf32, #tpu.memory_space<vmem>>, vector<1x64x64xf32>
    %49 = vector.shape_cast %48 : vector<1x64x64xf32> to vector<64x64xf32>
    %cst_29 = arith.constant 0.000000e+00 : f32
    %50 = vector.broadcast %cst_29 : f32 to vector<8x64xf32>
    %51 = vector.extract_strided_slice %47 {offsets = [0, 0], sizes = [8, 16], strides = [1, 1]} : vector<8x128xf32> to vector<8x16xf32>
    %52 = vector.extract_strided_slice %47 {offsets = [0, 64], sizes = [8, 16], strides = [1, 1]} : vector<8x128xf32> to vector<8x16xf32>
    %53 = vector.extract_strided_slice %47 {offsets = [0, 96], sizes = [8, 16], strides = [1, 1]} : vector<8x128xf32> to vector<8x16xf32>
    %cst_30 = arith.constant dense<0.000000e+00> : vector<8x8xf32>
    %54 = tpu.matmul %51, %52, %cst_30 {dimension_numbers = #tpu.dot_dimension_numbers<[1], [1], [0], [0], [0, 0, 1, 0], [], []>} : vector<8x16xf32>, vector<8x16xf32>, vector<8x8xf32> -> vector<8x8xf32>
    %cst_31 = arith.constant 2.500000e-01 : f32
    %55 = vector.broadcast %cst_31 : f32 to vector<8x8xf32>
    %56 = arith.mulf %54, %55 : vector<8x8xf32>
    %57 = arith.addf %56, %9 : vector<8x8xf32>
    %cst_32 = arith.constant dense<0xFF800000> : vector<8xf32>
    %58 = vector.multi_reduction <maximumf>, %57, %cst_32 [1] : vector<8x8xf32> to vector<8xf32>
    %59 = vector.shape_cast %58 : vector<8xf32> to vector<8x1xf32>
    %60 = vector.broadcast %59 : vector<8x1xf32> to vector<8x8xf32>
    %61 = arith.subf %57, %60 : vector<8x8xf32>
    %62 = math.exp %61 : vector<8x8xf32>
    %cst_33 = arith.constant dense<0.000000e+00> : vector<8xf32>
    %63 = vector.multi_reduction <add>, %62, %cst_33 [1] : vector<8x8xf32> to vector<8xf32>
    %64 = vector.shape_cast %63 : vector<8xf32> to vector<8x1xf32>
    %65 = tpu.reciprocal %64 {approx = true} : vector<8x1xf32> -> vector<8x1xf32>
    %66 = vector.broadcast %65 : vector<8x1xf32> to vector<8x8xf32>
    %67 = arith.mulf %62, %66 : vector<8x8xf32>
    %cst_34 = arith.constant dense<0.000000e+00> : vector<8x16xf32>
    %68 = tpu.matmul %67, %53, %cst_34 {dimension_numbers = #tpu.dot_dimension_numbers<[1], [0], [0], [1], [0, 0, 1, 1], [], []>} : vector<8x8xf32>, vector<8x16xf32>, vector<8x16xf32> -> vector<8x16xf32>
    %69 = vector.extract_strided_slice %49 {offsets = [0, 0], sizes = [16, 64], strides = [1, 1]} : vector<64x64xf32> to vector<16x64xf32>
    %cst_35 = arith.constant dense<0.000000e+00> : vector<8x64xf32>
    %70 = tpu.matmul %68, %69, %cst_35 {dimension_numbers = #tpu.dot_dimension_numbers<[1], [0], [0], [1], [0, 0, 1, 1], [], []>} : vector<8x16xf32>, vector<16x64xf32>, vector<8x64xf32> -> vector<8x64xf32>
    %71 = arith.addf %50, %70 : vector<8x64xf32>
    %72 = vector.extract_strided_slice %47 {offsets = [0, 16], sizes = [8, 16], strides = [1, 1]} : vector<8x128xf32> to vector<8x16xf32>
    %73 = vector.extract_strided_slice %47 {offsets = [0, 64], sizes = [8, 16], strides = [1, 1]} : vector<8x128xf32> to vector<8x16xf32>
    %74 = vector.extract_strided_slice %47 {offsets = [0, 96], sizes = [8, 16], strides = [1, 1]} : vector<8x128xf32> to vector<8x16xf32>
    %cst_36 = arith.constant dense<0.000000e+00> : vector<8x8xf32>
    %75 = tpu.matmul %72, %73, %cst_36 {dimension_numbers = #tpu.dot_dimension_numbers<[1], [1], [0], [0], [0, 0, 1, 0], [], []>} : vector<8x16xf32>, vector<8x16xf32>, vector<8x8xf32> -> vector<8x8xf32>
    %cst_37 = arith.constant 2.500000e-01 : f32
    %76 = vector.broadcast %cst_37 : f32 to vector<8x8xf32>
    %77 = arith.mulf %75, %76 : vector<8x8xf32>
    %78 = arith.addf %77, %9 : vector<8x8xf32>
    %cst_38 = arith.constant dense<0xFF800000> : vector<8xf32>
    %79 = vector.multi_reduction <maximumf>, %78, %cst_38 [1] : vector<8x8xf32> to vector<8xf32>
    %80 = vector.shape_cast %79 : vector<8xf32> to vector<8x1xf32>
    %81 = vector.broadcast %80 : vector<8x1xf32> to vector<8x8xf32>
    %82 = arith.subf %78, %81 : vector<8x8xf32>
    %83 = math.exp %82 : vector<8x8xf32>
    %cst_39 = arith.constant dense<0.000000e+00> : vector<8xf32>
    %84 = vector.multi_reduction <add>, %83, %cst_39 [1] : vector<8x8xf32> to vector<8xf32>
    %85 = vector.shape_cast %84 : vector<8xf32> to vector<8x1xf32>
    %86 = tpu.reciprocal %85 {approx = true} : vector<8x1xf32> -> vector<8x1xf32>
    %87 = vector.broadcast %86 : vector<8x1xf32> to vector<8x8xf32>
    %88 = arith.mulf %83, %87 : vector<8x8xf32>
    %cst_40 = arith.constant dense<0.000000e+00> : vector<8x16xf32>
    %89 = tpu.matmul %88, %74, %cst_40 {dimension_numbers = #tpu.dot_dimension_numbers<[1], [0], [0], [1], [0, 0, 1, 1], [], []>} : vector<8x8xf32>, vector<8x16xf32>, vector<8x16xf32> -> vector<8x16xf32>
    %90 = vector.extract_strided_slice %49 {offsets = [16, 0], sizes = [16, 64], strides = [1, 1]} : vector<64x64xf32> to vector<16x64xf32>
    %cst_41 = arith.constant dense<0.000000e+00> : vector<8x64xf32>
    %91 = tpu.matmul %89, %90, %cst_41 {dimension_numbers = #tpu.dot_dimension_numbers<[1], [0], [0], [1], [0, 0, 1, 1], [], []>} : vector<8x16xf32>, vector<16x64xf32>, vector<8x64xf32> -> vector<8x64xf32>
    %92 = arith.addf %71, %91 : vector<8x64xf32>
    %93 = vector.extract_strided_slice %47 {offsets = [0, 32], sizes = [8, 16], strides = [1, 1]} : vector<8x128xf32> to vector<8x16xf32>
    %94 = vector.extract_strided_slice %47 {offsets = [0, 80], sizes = [8, 16], strides = [1, 1]} : vector<8x128xf32> to vector<8x16xf32>
    %95 = vector.extract_strided_slice %47 {offsets = [0, 112], sizes = [8, 16], strides = [1, 1]} : vector<8x128xf32> to vector<8x16xf32>
    %cst_42 = arith.constant dense<0.000000e+00> : vector<8x8xf32>
    %96 = tpu.matmul %93, %94, %cst_42 {dimension_numbers = #tpu.dot_dimension_numbers<[1], [1], [0], [0], [0, 0, 1, 0], [], []>} : vector<8x16xf32>, vector<8x16xf32>, vector<8x8xf32> -> vector<8x8xf32>
    %cst_43 = arith.constant 2.500000e-01 : f32
    %97 = vector.broadcast %cst_43 : f32 to vector<8x8xf32>
    %98 = arith.mulf %96, %97 : vector<8x8xf32>
    %99 = arith.addf %98, %9 : vector<8x8xf32>
    %cst_44 = arith.constant dense<0xFF800000> : vector<8xf32>
    %100 = vector.multi_reduction <maximumf>, %99, %cst_44 [1] : vector<8x8xf32> to vector<8xf32>
    %101 = vector.shape_cast %100 : vector<8xf32> to vector<8x1xf32>
    %102 = vector.broadcast %101 : vector<8x1xf32> to vector<8x8xf32>
    %103 = arith.subf %99, %102 : vector<8x8xf32>
    %104 = math.exp %103 : vector<8x8xf32>
    %cst_45 = arith.constant dense<0.000000e+00> : vector<8xf32>
    %105 = vector.multi_reduction <add>, %104, %cst_45 [1] : vector<8x8xf32> to vector<8xf32>
    %106 = vector.shape_cast %105 : vector<8xf32> to vector<8x1xf32>
    %107 = tpu.reciprocal %106 {approx = true} : vector<8x1xf32> -> vector<8x1xf32>
    %108 = vector.broadcast %107 : vector<8x1xf32> to vector<8x8xf32>
    %109 = arith.mulf %104, %108 : vector<8x8xf32>
    %cst_46 = arith.constant dense<0.000000e+00> : vector<8x16xf32>
    %110 = tpu.matmul %109, %95, %cst_46 {dimension_numbers = #tpu.dot_dimension_numbers<[1], [0], [0], [1], [0, 0, 1, 1], [], []>} : vector<8x8xf32>, vector<8x16xf32>, vector<8x16xf32> -> vector<8x16xf32>
    %111 = vector.extract_strided_slice %49 {offsets = [32, 0], sizes = [16, 64], strides = [1, 1]} : vector<64x64xf32> to vector<16x64xf32>
    %cst_47 = arith.constant dense<0.000000e+00> : vector<8x64xf32>
    %112 = tpu.matmul %110, %111, %cst_47 {dimension_numbers = #tpu.dot_dimension_numbers<[1], [0], [0], [1], [0, 0, 1, 1], [], []>} : vector<8x16xf32>, vector<16x64xf32>, vector<8x64xf32> -> vector<8x64xf32>
    %113 = arith.addf %92, %112 : vector<8x64xf32>
    %114 = vector.extract_strided_slice %47 {offsets = [0, 48], sizes = [8, 16], strides = [1, 1]} : vector<8x128xf32> to vector<8x16xf32>
    %115 = vector.extract_strided_slice %47 {offsets = [0, 80], sizes = [8, 16], strides = [1, 1]} : vector<8x128xf32> to vector<8x16xf32>
    %116 = vector.extract_strided_slice %47 {offsets = [0, 112], sizes = [8, 16], strides = [1, 1]} : vector<8x128xf32> to vector<8x16xf32>
    %cst_48 = arith.constant dense<0.000000e+00> : vector<8x8xf32>
    %117 = tpu.matmul %114, %115, %cst_48 {dimension_numbers = #tpu.dot_dimension_numbers<[1], [1], [0], [0], [0, 0, 1, 0], [], []>} : vector<8x16xf32>, vector<8x16xf32>, vector<8x8xf32> -> vector<8x8xf32>
    %cst_49 = arith.constant 2.500000e-01 : f32
    %118 = vector.broadcast %cst_49 : f32 to vector<8x8xf32>
    %119 = arith.mulf %117, %118 : vector<8x8xf32>
    %120 = arith.addf %119, %9 : vector<8x8xf32>
    %cst_50 = arith.constant dense<0xFF800000> : vector<8xf32>
    %121 = vector.multi_reduction <maximumf>, %120, %cst_50 [1] : vector<8x8xf32> to vector<8xf32>
    %122 = vector.shape_cast %121 : vector<8xf32> to vector<8x1xf32>
    %123 = vector.broadcast %122 : vector<8x1xf32> to vector<8x8xf32>
    %124 = arith.subf %120, %123 : vector<8x8xf32>
    %125 = math.exp %124 : vector<8x8xf32>
    %cst_51 = arith.constant dense<0.000000e+00> : vector<8xf32>
    %126 = vector.multi_reduction <add>, %125, %cst_51 [1] : vector<8x8xf32> to vector<8xf32>
    %127 = vector.shape_cast %126 : vector<8xf32> to vector<8x1xf32>
    %128 = tpu.reciprocal %127 {approx = true} : vector<8x1xf32> -> vector<8x1xf32>
    %129 = vector.broadcast %128 : vector<8x1xf32> to vector<8x8xf32>
    %130 = arith.mulf %125, %129 : vector<8x8xf32>
    %cst_52 = arith.constant dense<0.000000e+00> : vector<8x16xf32>
    %131 = tpu.matmul %130, %116, %cst_52 {dimension_numbers = #tpu.dot_dimension_numbers<[1], [0], [0], [1], [0, 0, 1, 1], [], []>} : vector<8x8xf32>, vector<8x16xf32>, vector<8x16xf32> -> vector<8x16xf32>
    %132 = vector.extract_strided_slice %49 {offsets = [48, 0], sizes = [16, 64], strides = [1, 1]} : vector<64x64xf32> to vector<16x64xf32>
    %cst_53 = arith.constant dense<0.000000e+00> : vector<8x64xf32>
    %133 = tpu.matmul %131, %132, %cst_53 {dimension_numbers = #tpu.dot_dimension_numbers<[1], [0], [0], [1], [0, 0, 1, 1], [], []>} : vector<8x16xf32>, vector<16x64xf32>, vector<8x64xf32> -> vector<8x64xf32>
    %134 = arith.addf %113, %133 : vector<8x64xf32>
    %135 = arith.addf %0, %134 : vector<8x64xf32>
    %c0_54 = arith.constant 0 : index
    %c0_55 = arith.constant 0 : index
    %c0_56 = arith.constant 0 : index
    %136 = vector.load %arg9[%c0_54, %c0_55, %c0_56] : memref<2x1x64xf32, #tpu.memory_space<vmem>>, vector<1x1x64xf32>
    %137 = vector.shape_cast %136 : vector<1x1x64xf32> to vector<1x64xf32>
    %c0_57 = arith.constant 0 : index
    %c0_58 = arith.constant 0 : index
    %c0_59 = arith.constant 0 : index
    %138 = vector.load %arg10[%c0_57, %c0_58, %c0_59] : memref<2x1x64xf32, #tpu.memory_space<vmem>>, vector<1x1x64xf32>
    %139 = vector.shape_cast %138 : vector<1x1x64xf32> to vector<1x64xf32>
    %cst_60 = arith.constant dense<0.000000e+00> : vector<8xf32>
    %140 = vector.multi_reduction <add>, %135, %cst_60 [1] : vector<8x64xf32> to vector<8xf32>
    %141 = vector.shape_cast %140 : vector<8xf32> to vector<8x1xf32>
    %cst_61 = arith.constant 6.400000e+01 : f32
    %142 = vector.broadcast %cst_61 : f32 to vector<8x1xf32>
    %143 = arith.divf %141, %142 : vector<8x1xf32>
    %144 = vector.broadcast %143 : vector<8x1xf32> to vector<8x64xf32>
    %145 = arith.subf %135, %144 : vector<8x64xf32>
    %146 = arith.mulf %145, %145 : vector<8x64xf32>
    %cst_62 = arith.constant dense<0.000000e+00> : vector<8xf32>
    %147 = vector.multi_reduction <add>, %146, %cst_62 [1] : vector<8x64xf32> to vector<8xf32>
    %148 = vector.shape_cast %147 : vector<8xf32> to vector<8x1xf32>
    %cst_63 = arith.constant 6.400000e+01 : f32
    %149 = vector.broadcast %cst_63 : f32 to vector<8x1xf32>
    %150 = arith.divf %148, %149 : vector<8x1xf32>
    %cst_64 = arith.constant 9.99999974E-6 : f32
    %151 = vector.broadcast %cst_64 : f32 to vector<8x1xf32>
    %152 = arith.addf %150, %151 : vector<8x1xf32>
    %153 = math.rsqrt %152 : vector<8x1xf32>
    %154 = vector.broadcast %153 : vector<8x1xf32> to vector<8x64xf32>
    %155 = arith.mulf %145, %154 : vector<8x64xf32>
    %156 = vector.broadcast %137 : vector<1x64xf32> to vector<8x64xf32>
    %157 = arith.mulf %155, %156 : vector<8x64xf32>
    %158 = vector.broadcast %139 : vector<1x64xf32> to vector<8x64xf32>
    %159 = arith.addf %157, %158 : vector<8x64xf32>
    %c0_65 = arith.constant 0 : index
    %c0_66 = arith.constant 0 : index
    %c0_67 = arith.constant 0 : index
    %160 = vector.load %arg11[%c0_65, %c0_66, %c0_67] : memref<2x64x256xf32, #tpu.memory_space<vmem>>, vector<1x64x256xf32>
    %161 = vector.shape_cast %160 : vector<1x64x256xf32> to vector<64x256xf32>
    %cst_68 = arith.constant dense<0.000000e+00> : vector<8x256xf32>
    %162 = tpu.matmul %159, %161, %cst_68 {dimension_numbers = #tpu.dot_dimension_numbers<[1], [0], [0], [1], [0, 0, 1, 1], [], []>} : vector<8x64xf32>, vector<64x256xf32>, vector<8x256xf32> -> vector<8x256xf32>
    %163 = vector.extract_strided_slice %162 {offsets = [0, 0], sizes = [8, 128], strides = [1, 1]} : vector<8x256xf32> to vector<8x128xf32>
    %164 = vector.extract_strided_slice %162 {offsets = [0, 128], sizes = [8, 128], strides = [1, 1]} : vector<8x256xf32> to vector<8x128xf32>
    %165 = arith.negf %163 : vector<8x128xf32>
    %166 = math.exp %165 : vector<8x128xf32>
    %cst_69 = arith.constant 1.000000e+00 : f32
    %167 = vector.broadcast %cst_69 : f32 to vector<8x128xf32>
    %168 = arith.addf %167, %166 : vector<8x128xf32>
    %169 = arith.divf %167, %168 : vector<8x128xf32>
    %170 = arith.mulf %163, %169 : vector<8x128xf32>
    %171 = arith.mulf %170, %164 : vector<8x128xf32>
    %c0_70 = arith.constant 0 : index
    %c0_71 = arith.constant 0 : index
    %c0_72 = arith.constant 0 : index
    %172 = vector.load %arg12[%c0_70, %c0_71, %c0_72] : memref<2x128x64xf32, #tpu.memory_space<vmem>>, vector<1x128x64xf32>
    %173 = vector.shape_cast %172 : vector<1x128x64xf32> to vector<128x64xf32>
    %cst_73 = arith.constant dense<0.000000e+00> : vector<8x64xf32>
    %174 = tpu.matmul %171, %173, %cst_73 {dimension_numbers = #tpu.dot_dimension_numbers<[1], [0], [0], [1], [0, 0, 1, 1], [], []>} : vector<8x128xf32>, vector<128x64xf32>, vector<8x64xf32> -> vector<8x64xf32>
    %175 = arith.addf %135, %174 : vector<8x64xf32>
    %c1 = arith.constant 1 : index
    %c0_74 = arith.constant 0 : index
    %c0_75 = arith.constant 0 : index
    %176 = vector.load %arg4[%c1, %c0_74, %c0_75] : memref<2x1x64xf32, #tpu.memory_space<vmem>>, vector<1x1x64xf32>
    %177 = vector.shape_cast %176 : vector<1x1x64xf32> to vector<1x64xf32>
    %c1_76 = arith.constant 1 : index
    %c0_77 = arith.constant 0 : index
    %c0_78 = arith.constant 0 : index
    %178 = vector.load %arg5[%c1_76, %c0_77, %c0_78] : memref<2x1x64xf32, #tpu.memory_space<vmem>>, vector<1x1x64xf32>
    %179 = vector.shape_cast %178 : vector<1x1x64xf32> to vector<1x64xf32>
    %cst_79 = arith.constant dense<0.000000e+00> : vector<8xf32>
    %180 = vector.multi_reduction <add>, %175, %cst_79 [1] : vector<8x64xf32> to vector<8xf32>
    %181 = vector.shape_cast %180 : vector<8xf32> to vector<8x1xf32>
    %cst_80 = arith.constant 6.400000e+01 : f32
    %182 = vector.broadcast %cst_80 : f32 to vector<8x1xf32>
    %183 = arith.divf %181, %182 : vector<8x1xf32>
    %184 = vector.broadcast %183 : vector<8x1xf32> to vector<8x64xf32>
    %185 = arith.subf %175, %184 : vector<8x64xf32>
    %186 = arith.mulf %185, %185 : vector<8x64xf32>
    %cst_81 = arith.constant dense<0.000000e+00> : vector<8xf32>
    %187 = vector.multi_reduction <add>, %186, %cst_81 [1] : vector<8x64xf32> to vector<8xf32>
    %188 = vector.shape_cast %187 : vector<8xf32> to vector<8x1xf32>
    %cst_82 = arith.constant 6.400000e+01 : f32
    %189 = vector.broadcast %cst_82 : f32 to vector<8x1xf32>
    %190 = arith.divf %188, %189 : vector<8x1xf32>
    %cst_83 = arith.constant 9.99999974E-6 : f32
    %191 = vector.broadcast %cst_83 : f32 to vector<8x1xf32>
    %192 = arith.addf %190, %191 : vector<8x1xf32>
    %193 = math.rsqrt %192 : vector<8x1xf32>
    %194 = vector.broadcast %193 : vector<8x1xf32> to vector<8x64xf32>
    %195 = arith.mulf %185, %194 : vector<8x64xf32>
    %196 = vector.broadcast %177 : vector<1x64xf32> to vector<8x64xf32>
    %197 = arith.mulf %195, %196 : vector<8x64xf32>
    %198 = vector.broadcast %179 : vector<1x64xf32> to vector<8x64xf32>
    %199 = arith.addf %197, %198 : vector<8x64xf32>
    %c1_84 = arith.constant 1 : index
    %c0_85 = arith.constant 0 : index
    %c0_86 = arith.constant 0 : index
    %200 = vector.load %arg6[%c1_84, %c0_85, %c0_86] : memref<2x64x128xf32, #tpu.memory_space<vmem>>, vector<1x64x128xf32>
    %201 = vector.shape_cast %200 : vector<1x64x128xf32> to vector<64x128xf32>
    %cst_87 = arith.constant dense<0.000000e+00> : vector<8x128xf32>
    %202 = tpu.matmul %199, %201, %cst_87 {dimension_numbers = #tpu.dot_dimension_numbers<[1], [0], [0], [1], [0, 0, 1, 1], [], []>} : vector<8x64xf32>, vector<64x128xf32>, vector<8x128xf32> -> vector<8x128xf32>
    %c1_88 = arith.constant 1 : index
    %c0_89 = arith.constant 0 : index
    %c0_90 = arith.constant 0 : index
    %203 = vector.load %arg7[%c1_88, %c0_89, %c0_90] : memref<2x1x128xf32, #tpu.memory_space<vmem>>, vector<1x1x128xf32>
    %204 = vector.shape_cast %203 : vector<1x1x128xf32> to vector<1x128xf32>
    %205 = vector.broadcast %204 : vector<1x128xf32> to vector<8x128xf32>
    %206 = arith.addf %202, %205 : vector<8x128xf32>
    %c126_i32_91 = arith.constant 126 : i32
    %207 = tpu.dynamic_rotate %206 by %c126_i32_91 dim 1 : vector<8x128xf32>, i32 -> vector<8x128xf32>
    %c2_i32_92 = arith.constant 2 : i32
    %208 = tpu.dynamic_rotate %206 by %c2_i32_92 dim 1 : vector<8x128xf32>, i32 -> vector<8x128xf32>
    %209 = arith.mulf %206, %1 : vector<8x128xf32>
    %210 = arith.mulf %207, %2 : vector<8x128xf32>
    %211 = arith.addf %209, %210 : vector<8x128xf32>
    %212 = arith.mulf %208, %3 : vector<8x128xf32>
    %213 = arith.addf %211, %212 : vector<8x128xf32>
    %c1_93 = arith.constant 1 : index
    %c0_94 = arith.constant 0 : index
    %c0_95 = arith.constant 0 : index
    %214 = vector.load %arg8[%c1_93, %c0_94, %c0_95] : memref<2x64x64xf32, #tpu.memory_space<vmem>>, vector<1x64x64xf32>
    %215 = vector.shape_cast %214 : vector<1x64x64xf32> to vector<64x64xf32>
    %cst_96 = arith.constant 0.000000e+00 : f32
    %216 = vector.broadcast %cst_96 : f32 to vector<8x64xf32>
    %217 = vector.extract_strided_slice %213 {offsets = [0, 0], sizes = [8, 16], strides = [1, 1]} : vector<8x128xf32> to vector<8x16xf32>
    %218 = vector.extract_strided_slice %213 {offsets = [0, 64], sizes = [8, 16], strides = [1, 1]} : vector<8x128xf32> to vector<8x16xf32>
    %219 = vector.extract_strided_slice %213 {offsets = [0, 96], sizes = [8, 16], strides = [1, 1]} : vector<8x128xf32> to vector<8x16xf32>
    %cst_97 = arith.constant dense<0.000000e+00> : vector<8x8xf32>
    %220 = tpu.matmul %217, %218, %cst_97 {dimension_numbers = #tpu.dot_dimension_numbers<[1], [1], [0], [0], [0, 0, 1, 0], [], []>} : vector<8x16xf32>, vector<8x16xf32>, vector<8x8xf32> -> vector<8x8xf32>
    %cst_98 = arith.constant 2.500000e-01 : f32
    %221 = vector.broadcast %cst_98 : f32 to vector<8x8xf32>
    %222 = arith.mulf %220, %221 : vector<8x8xf32>
    %223 = arith.addf %222, %9 : vector<8x8xf32>
    %cst_99 = arith.constant dense<0xFF800000> : vector<8xf32>
    %224 = vector.multi_reduction <maximumf>, %223, %cst_99 [1] : vector<8x8xf32> to vector<8xf32>
    %225 = vector.shape_cast %224 : vector<8xf32> to vector<8x1xf32>
    %226 = vector.broadcast %225 : vector<8x1xf32> to vector<8x8xf32>
    %227 = arith.subf %223, %226 : vector<8x8xf32>
    %228 = math.exp %227 : vector<8x8xf32>
    %cst_100 = arith.constant dense<0.000000e+00> : vector<8xf32>
    %229 = vector.multi_reduction <add>, %228, %cst_100 [1] : vector<8x8xf32> to vector<8xf32>
    %230 = vector.shape_cast %229 : vector<8xf32> to vector<8x1xf32>
    %231 = tpu.reciprocal %230 {approx = true} : vector<8x1xf32> -> vector<8x1xf32>
    %232 = vector.broadcast %231 : vector<8x1xf32> to vector<8x8xf32>
    %233 = arith.mulf %228, %232 : vector<8x8xf32>
    %cst_101 = arith.constant dense<0.000000e+00> : vector<8x16xf32>
    %234 = tpu.matmul %233, %219, %cst_101 {dimension_numbers = #tpu.dot_dimension_numbers<[1], [0], [0], [1], [0, 0, 1, 1], [], []>} : vector<8x8xf32>, vector<8x16xf32>, vector<8x16xf32> -> vector<8x16xf32>
    %235 = vector.extract_strided_slice %215 {offsets = [0, 0], sizes = [16, 64], strides = [1, 1]} : vector<64x64xf32> to vector<16x64xf32>
    %cst_102 = arith.constant dense<0.000000e+00> : vector<8x64xf32>
    %236 = tpu.matmul %234, %235, %cst_102 {dimension_numbers = #tpu.dot_dimension_numbers<[1], [0], [0], [1], [0, 0, 1, 1], [], []>} : vector<8x16xf32>, vector<16x64xf32>, vector<8x64xf32> -> vector<8x64xf32>
    %237 = arith.addf %216, %236 : vector<8x64xf32>
    %238 = vector.extract_strided_slice %213 {offsets = [0, 16], sizes = [8, 16], strides = [1, 1]} : vector<8x128xf32> to vector<8x16xf32>
    %239 = vector.extract_strided_slice %213 {offsets = [0, 64], sizes = [8, 16], strides = [1, 1]} : vector<8x128xf32> to vector<8x16xf32>
    %240 = vector.extract_strided_slice %213 {offsets = [0, 96], sizes = [8, 16], strides = [1, 1]} : vector<8x128xf32> to vector<8x16xf32>
    %cst_103 = arith.constant dense<0.000000e+00> : vector<8x8xf32>
    %241 = tpu.matmul %238, %239, %cst_103 {dimension_numbers = #tpu.dot_dimension_numbers<[1], [1], [0], [0], [0, 0, 1, 0], [], []>} : vector<8x16xf32>, vector<8x16xf32>, vector<8x8xf32> -> vector<8x8xf32>
    %cst_104 = arith.constant 2.500000e-01 : f32
    %242 = vector.broadcast %cst_104 : f32 to vector<8x8xf32>
    %243 = arith.mulf %241, %242 : vector<8x8xf32>
    %244 = arith.addf %243, %9 : vector<8x8xf32>
    %cst_105 = arith.constant dense<0xFF800000> : vector<8xf32>
    %245 = vector.multi_reduction <maximumf>, %244, %cst_105 [1] : vector<8x8xf32> to vector<8xf32>
    %246 = vector.shape_cast %245 : vector<8xf32> to vector<8x1xf32>
    %247 = vector.broadcast %246 : vector<8x1xf32> to vector<8x8xf32>
    %248 = arith.subf %244, %247 : vector<8x8xf32>
    %249 = math.exp %248 : vector<8x8xf32>
    %cst_106 = arith.constant dense<0.000000e+00> : vector<8xf32>
    %250 = vector.multi_reduction <add>, %249, %cst_106 [1] : vector<8x8xf32> to vector<8xf32>
    %251 = vector.shape_cast %250 : vector<8xf32> to vector<8x1xf32>
    %252 = tpu.reciprocal %251 {approx = true} : vector<8x1xf32> -> vector<8x1xf32>
    %253 = vector.broadcast %252 : vector<8x1xf32> to vector<8x8xf32>
    %254 = arith.mulf %249, %253 : vector<8x8xf32>
    %cst_107 = arith.constant dense<0.000000e+00> : vector<8x16xf32>
    %255 = tpu.matmul %254, %240, %cst_107 {dimension_numbers = #tpu.dot_dimension_numbers<[1], [0], [0], [1], [0, 0, 1, 1], [], []>} : vector<8x8xf32>, vector<8x16xf32>, vector<8x16xf32> -> vector<8x16xf32>
    %256 = vector.extract_strided_slice %215 {offsets = [16, 0], sizes = [16, 64], strides = [1, 1]} : vector<64x64xf32> to vector<16x64xf32>
    %cst_108 = arith.constant dense<0.000000e+00> : vector<8x64xf32>
    %257 = tpu.matmul %255, %256, %cst_108 {dimension_numbers = #tpu.dot_dimension_numbers<[1], [0], [0], [1], [0, 0, 1, 1], [], []>} : vector<8x16xf32>, vector<16x64xf32>, vector<8x64xf32> -> vector<8x64xf32>
    %258 = arith.addf %237, %257 : vector<8x64xf32>
    %259 = vector.extract_strided_slice %213 {offsets = [0, 32], sizes = [8, 16], strides = [1, 1]} : vector<8x128xf32> to vector<8x16xf32>
    %260 = vector.extract_strided_slice %213 {offsets = [0, 80], sizes = [8, 16], strides = [1, 1]} : vector<8x128xf32> to vector<8x16xf32>
    %261 = vector.extract_strided_slice %213 {offsets = [0, 112], sizes = [8, 16], strides = [1, 1]} : vector<8x128xf32> to vector<8x16xf32>
    %cst_109 = arith.constant dense<0.000000e+00> : vector<8x8xf32>
    %262 = tpu.matmul %259, %260, %cst_109 {dimension_numbers = #tpu.dot_dimension_numbers<[1], [1], [0], [0], [0, 0, 1, 0], [], []>} : vector<8x16xf32>, vector<8x16xf32>, vector<8x8xf32> -> vector<8x8xf32>
    %cst_110 = arith.constant 2.500000e-01 : f32
    %263 = vector.broadcast %cst_110 : f32 to vector<8x8xf32>
    %264 = arith.mulf %262, %263 : vector<8x8xf32>
    %265 = arith.addf %264, %9 : vector<8x8xf32>
    %cst_111 = arith.constant dense<0xFF800000> : vector<8xf32>
    %266 = vector.multi_reduction <maximumf>, %265, %cst_111 [1] : vector<8x8xf32> to vector<8xf32>
    %267 = vector.shape_cast %266 : vector<8xf32> to vector<8x1xf32>
    %268 = vector.broadcast %267 : vector<8x1xf32> to vector<8x8xf32>
    %269 = arith.subf %265, %268 : vector<8x8xf32>
    %270 = math.exp %269 : vector<8x8xf32>
    %cst_112 = arith.constant dense<0.000000e+00> : vector<8xf32>
    %271 = vector.multi_reduction <add>, %270, %cst_112 [1] : vector<8x8xf32> to vector<8xf32>
    %272 = vector.shape_cast %271 : vector<8xf32> to vector<8x1xf32>
    %273 = tpu.reciprocal %272 {approx = true} : vector<8x1xf32> -> vector<8x1xf32>
    %274 = vector.broadcast %273 : vector<8x1xf32> to vector<8x8xf32>
    %275 = arith.mulf %270, %274 : vector<8x8xf32>
    %cst_113 = arith.constant dense<0.000000e+00> : vector<8x16xf32>
    %276 = tpu.matmul %275, %261, %cst_113 {dimension_numbers = #tpu.dot_dimension_numbers<[1], [0], [0], [1], [0, 0, 1, 1], [], []>} : vector<8x8xf32>, vector<8x16xf32>, vector<8x16xf32> -> vector<8x16xf32>
    %277 = vector.extract_strided_slice %215 {offsets = [32, 0], sizes = [16, 64], strides = [1, 1]} : vector<64x64xf32> to vector<16x64xf32>
    %cst_114 = arith.constant dense<0.000000e+00> : vector<8x64xf32>
    %278 = tpu.matmul %276, %277, %cst_114 {dimension_numbers = #tpu.dot_dimension_numbers<[1], [0], [0], [1], [0, 0, 1, 1], [], []>} : vector<8x16xf32>, vector<16x64xf32>, vector<8x64xf32> -> vector<8x64xf32>
    %279 = arith.addf %258, %278 : vector<8x64xf32>
    %280 = vector.extract_strided_slice %213 {offsets = [0, 48], sizes = [8, 16], strides = [1, 1]} : vector<8x128xf32> to vector<8x16xf32>
    %281 = vector.extract_strided_slice %213 {offsets = [0, 80], sizes = [8, 16], strides = [1, 1]} : vector<8x128xf32> to vector<8x16xf32>
    %282 = vector.extract_strided_slice %213 {offsets = [0, 112], sizes = [8, 16], strides = [1, 1]} : vector<8x128xf32> to vector<8x16xf32>
    %cst_115 = arith.constant dense<0.000000e+00> : vector<8x8xf32>
    %283 = tpu.matmul %280, %281, %cst_115 {dimension_numbers = #tpu.dot_dimension_numbers<[1], [1], [0], [0], [0, 0, 1, 0], [], []>} : vector<8x16xf32>, vector<8x16xf32>, vector<8x8xf32> -> vector<8x8xf32>
    %cst_116 = arith.constant 2.500000e-01 : f32
    %284 = vector.broadcast %cst_116 : f32 to vector<8x8xf32>
    %285 = arith.mulf %283, %284 : vector<8x8xf32>
    %286 = arith.addf %285, %9 : vector<8x8xf32>
    %cst_117 = arith.constant dense<0xFF800000> : vector<8xf32>
    %287 = vector.multi_reduction <maximumf>, %286, %cst_117 [1] : vector<8x8xf32> to vector<8xf32>
    %288 = vector.shape_cast %287 : vector<8xf32> to vector<8x1xf32>
    %289 = vector.broadcast %288 : vector<8x1xf32> to vector<8x8xf32>
    %290 = arith.subf %286, %289 : vector<8x8xf32>
    %291 = math.exp %290 : vector<8x8xf32>
    %cst_118 = arith.constant dense<0.000000e+00> : vector<8xf32>
    %292 = vector.multi_reduction <add>, %291, %cst_118 [1] : vector<8x8xf32> to vector<8xf32>
    %293 = vector.shape_cast %292 : vector<8xf32> to vector<8x1xf32>
    %294 = tpu.reciprocal %293 {approx = true} : vector<8x1xf32> -> vector<8x1xf32>
    %295 = vector.broadcast %294 : vector<8x1xf32> to vector<8x8xf32>
    %296 = arith.mulf %291, %295 : vector<8x8xf32>
    %cst_119 = arith.constant dense<0.000000e+00> : vector<8x16xf32>
    %297 = tpu.matmul %296, %282, %cst_119 {dimension_numbers = #tpu.dot_dimension_numbers<[1], [0], [0], [1], [0, 0, 1, 1], [], []>} : vector<8x8xf32>, vector<8x16xf32>, vector<8x16xf32> -> vector<8x16xf32>
    %298 = vector.extract_strided_slice %215 {offsets = [48, 0], sizes = [16, 64], strides = [1, 1]} : vector<64x64xf32> to vector<16x64xf32>
    %cst_120 = arith.constant dense<0.000000e+00> : vector<8x64xf32>
    %299 = tpu.matmul %297, %298, %cst_120 {dimension_numbers = #tpu.dot_dimension_numbers<[1], [0], [0], [1], [0, 0, 1, 1], [], []>} : vector<8x16xf32>, vector<16x64xf32>, vector<8x64xf32> -> vector<8x64xf32>
    %300 = arith.addf %279, %299 : vector<8x64xf32>
    %301 = arith.addf %175, %300 : vector<8x64xf32>
    %c1_121 = arith.constant 1 : index
    %c0_122 = arith.constant 0 : index
    %c0_123 = arith.constant 0 : index
    %302 = vector.load %arg9[%c1_121, %c0_122, %c0_123] : memref<2x1x64xf32, #tpu.memory_space<vmem>>, vector<1x1x64xf32>
    %303 = vector.shape_cast %302 : vector<1x1x64xf32> to vector<1x64xf32>
    %c1_124 = arith.constant 1 : index
    %c0_125 = arith.constant 0 : index
    %c0_126 = arith.constant 0 : index
    %304 = vector.load %arg10[%c1_124, %c0_125, %c0_126] : memref<2x1x64xf32, #tpu.memory_space<vmem>>, vector<1x1x64xf32>
    %305 = vector.shape_cast %304 : vector<1x1x64xf32> to vector<1x64xf32>
    %cst_127 = arith.constant dense<0.000000e+00> : vector<8xf32>
    %306 = vector.multi_reduction <add>, %301, %cst_127 [1] : vector<8x64xf32> to vector<8xf32>
    %307 = vector.shape_cast %306 : vector<8xf32> to vector<8x1xf32>
    %cst_128 = arith.constant 6.400000e+01 : f32
    %308 = vector.broadcast %cst_128 : f32 to vector<8x1xf32>
    %309 = arith.divf %307, %308 : vector<8x1xf32>
    %310 = vector.broadcast %309 : vector<8x1xf32> to vector<8x64xf32>
    %311 = arith.subf %301, %310 : vector<8x64xf32>
    %312 = arith.mulf %311, %311 : vector<8x64xf32>
    %cst_129 = arith.constant dense<0.000000e+00> : vector<8xf32>
    %313 = vector.multi_reduction <add>, %312, %cst_129 [1] : vector<8x64xf32> to vector<8xf32>
    %314 = vector.shape_cast %313 : vector<8xf32> to vector<8x1xf32>
    %cst_130 = arith.constant 6.400000e+01 : f32
    %315 = vector.broadcast %cst_130 : f32 to vector<8x1xf32>
    %316 = arith.divf %314, %315 : vector<8x1xf32>
    %cst_131 = arith.constant 9.99999974E-6 : f32
    %317 = vector.broadcast %cst_131 : f32 to vector<8x1xf32>
    %318 = arith.addf %316, %317 : vector<8x1xf32>
    %319 = math.rsqrt %318 : vector<8x1xf32>
    %320 = vector.broadcast %319 : vector<8x1xf32> to vector<8x64xf32>
    %321 = arith.mulf %311, %320 : vector<8x64xf32>
    %322 = vector.broadcast %303 : vector<1x64xf32> to vector<8x64xf32>
    %323 = arith.mulf %321, %322 : vector<8x64xf32>
    %324 = vector.broadcast %305 : vector<1x64xf32> to vector<8x64xf32>
    %325 = arith.addf %323, %324 : vector<8x64xf32>
    %c1_132 = arith.constant 1 : index
    %c0_133 = arith.constant 0 : index
    %c0_134 = arith.constant 0 : index
    %326 = vector.load %arg11[%c1_132, %c0_133, %c0_134] : memref<2x64x256xf32, #tpu.memory_space<vmem>>, vector<1x64x256xf32>
    %327 = vector.shape_cast %326 : vector<1x64x256xf32> to vector<64x256xf32>
    %cst_135 = arith.constant dense<0.000000e+00> : vector<8x256xf32>
    %328 = tpu.matmul %325, %327, %cst_135 {dimension_numbers = #tpu.dot_dimension_numbers<[1], [0], [0], [1], [0, 0, 1, 1], [], []>} : vector<8x64xf32>, vector<64x256xf32>, vector<8x256xf32> -> vector<8x256xf32>
    %329 = vector.extract_strided_slice %328 {offsets = [0, 0], sizes = [8, 128], strides = [1, 1]} : vector<8x256xf32> to vector<8x128xf32>
    %330 = vector.extract_strided_slice %328 {offsets = [0, 128], sizes = [8, 128], strides = [1, 1]} : vector<8x256xf32> to vector<8x128xf32>
    %331 = arith.negf %329 : vector<8x128xf32>
    %332 = math.exp %331 : vector<8x128xf32>
    %cst_136 = arith.constant 1.000000e+00 : f32
    %333 = vector.broadcast %cst_136 : f32 to vector<8x128xf32>
    %334 = arith.addf %333, %332 : vector<8x128xf32>
    %335 = arith.divf %333, %334 : vector<8x128xf32>
    %336 = arith.mulf %329, %335 : vector<8x128xf32>
    %337 = arith.mulf %336, %330 : vector<8x128xf32>
    %c1_137 = arith.constant 1 : index
    %c0_138 = arith.constant 0 : index
    %c0_139 = arith.constant 0 : index
    %338 = vector.load %arg12[%c1_137, %c0_138, %c0_139] : memref<2x128x64xf32, #tpu.memory_space<vmem>>, vector<1x128x64xf32>
    %339 = vector.shape_cast %338 : vector<1x128x64xf32> to vector<128x64xf32>
    %cst_140 = arith.constant dense<0.000000e+00> : vector<8x64xf32>
    %340 = tpu.matmul %337, %339, %cst_140 {dimension_numbers = #tpu.dot_dimension_numbers<[1], [0], [0], [1], [0, 0, 1, 1], [], []>} : vector<8x128xf32>, vector<128x64xf32>, vector<8x64xf32> -> vector<8x64xf32>
    %341 = arith.addf %301, %340 : vector<8x64xf32>
    %c0_141 = arith.constant 0 : index
    %c0_142 = arith.constant 0 : index
    %342 = vector.load %arg13[%c0_141, %c0_142] : memref<1x64xf32, #tpu.memory_space<vmem>>, vector<1x64xf32>
    %c0_143 = arith.constant 0 : index
    %c0_144 = arith.constant 0 : index
    %343 = vector.load %arg14[%c0_143, %c0_144] : memref<1x64xf32, #tpu.memory_space<vmem>>, vector<1x64xf32>
    %cst_145 = arith.constant dense<0.000000e+00> : vector<8xf32>
    %344 = vector.multi_reduction <add>, %341, %cst_145 [1] : vector<8x64xf32> to vector<8xf32>
    %345 = vector.shape_cast %344 : vector<8xf32> to vector<8x1xf32>
    %cst_146 = arith.constant 6.400000e+01 : f32
    %346 = vector.broadcast %cst_146 : f32 to vector<8x1xf32>
    %347 = arith.divf %345, %346 : vector<8x1xf32>
    %348 = vector.broadcast %347 : vector<8x1xf32> to vector<8x64xf32>
    %349 = arith.subf %341, %348 : vector<8x64xf32>
    %350 = arith.mulf %349, %349 : vector<8x64xf32>
    %cst_147 = arith.constant dense<0.000000e+00> : vector<8xf32>
    %351 = vector.multi_reduction <add>, %350, %cst_147 [1] : vector<8x64xf32> to vector<8xf32>
    %352 = vector.shape_cast %351 : vector<8xf32> to vector<8x1xf32>
    %cst_148 = arith.constant 6.400000e+01 : f32
    %353 = vector.broadcast %cst_148 : f32 to vector<8x1xf32>
    %354 = arith.divf %352, %353 : vector<8x1xf32>
    %cst_149 = arith.constant 9.99999974E-6 : f32
    %355 = vector.broadcast %cst_149 : f32 to vector<8x1xf32>
    %356 = arith.addf %354, %355 : vector<8x1xf32>
    %357 = math.rsqrt %356 : vector<8x1xf32>
    %358 = vector.broadcast %357 : vector<8x1xf32> to vector<8x64xf32>
    %359 = arith.mulf %349, %358 : vector<8x64xf32>
    %360 = vector.broadcast %342 : vector<1x64xf32> to vector<8x64xf32>
    %361 = arith.mulf %359, %360 : vector<8x64xf32>
    %362 = vector.broadcast %343 : vector<1x64xf32> to vector<8x64xf32>
    %363 = arith.addf %361, %362 : vector<8x64xf32>
    %c0_150 = arith.constant 0 : index
    %c0_151 = arith.constant 0 : index
    %364 = vector.load %arg15[%c0_150, %c0_151] : memref<8x64xf32, #tpu.memory_space<vmem>>, vector<8x64xf32>
    tpu.vector_store %arg15[%c0_150, %c0_151], %363 {strides = array<i32>} : memref<8x64xf32, #tpu.memory_space<vmem>>, vector<8x64xf32>,
    return
  }
}

</mosaic_0001>

<bundles_post_ra>
// kernel: stablelm_forward.1
= control target key start
LH: loop header
LB: loop body
LE: loop exit
PB: predicated region body
PF: predicated region fallthrough
CT: control target
= control target key end

     0   :  { %vm63_vm0 = vcmask 523264   ;;  %s4072_s0 = inlined_call_operand.vmem [shape: f32[8,64], index: 0, kind: input, shape index: {}]   ;;  %s4073_s1 = inlined_call_operand.vmem [shape: f32[8,128], index: 1, kind: input, shape index: {}]   ;;  %s4074_s2 = inlined_call_operand.vmem [shape: f32[8,128], index: 2, kind: input, shape index: {}]   ;;  %s4075_s3 = inlined_call_operand.vmem [shape: f32[8,128], index: 3, kind: input, shape index: {}]   ;;  %s4076_s4 = inlined_call_operand.vmem [shape: f32[2,1,64], index: 4, kind: input, shape index: {}]   ;;  %s4077_s5 = inlined_call_operand.vmem [shape: f32[2,1,64], index: 5, kind: input, shape index: {}]   ;;  %s4078_s6 = inlined_call_operand.vmem [shape: f32[2,64,128], index: 6, kind: input, shape index: {}]   ;;  %s4079_s7 = inlined_call_operand.vmem [shape: f32[2,1,128], index: 7, kind: input, shape index: {}]   ;;  %s4080_s8 = inlined_call_operand.vmem [shape: f32[2,64,64], index: 8, kind: input, shape index: {}]   ;;  %s4081_s9 = inlined_call_operand.vmem [shape: f32[2,1,64], index: 9, kind: input, shape index: {}]   ;;  %s4082_s10 = inlined_call_operand.vmem [shape: f32[2,1,64], index: 10, kind: input, shape index: {}]   ;;  %s4083_s11 = inlined_call_operand.vmem [shape: f32[2,64,256], index: 11, kind: input, shape index: {}]   ;;  %s4084_s12 = inlined_call_operand.vmem [shape: f32[2,128,64], index: 12, kind: input, shape index: {}]   ;;  %s4085_s13 = inlined_call_operand.vmem [shape: f32[1,64], index: 13, kind: input, shape index: {}]   ;;  %s4086_s14 = inlined_call_operand.vmem [shape: f32[1,64], index: 14, kind: input, shape index: {}]   ;;  %s4087_s15 = inlined_call_operand.hbm [shape: f32[8,64], index: 15, kind: output, shape index: {}]  }
   0x1   :  { %v3478_v0 = vld [vmem:[%s4072_s0] sm:$0xff] }
   0x2   :  { %20 = vsyncpa [#allocation3], 0  ;;  %v64_v1 = vsel %vm63_vm0, %v3478_v0, 0.0  ;;  %v92_v7 = vld [vmem:[%s4078_s6] sm:$0xff]  ;;  %v93_v8 = vld [vmem:[%s4078_s6 + $0x8] sm:$0xff]  ;;  %v3381_v12 = vmov 0.0|0.0   ;;  %v55_v46 = vlaneseq }
   0x3   :  { %65 = vadd.xlane.f32.xlu0 %v64_v1  ;;  %v3166_v9 = vpack.c.bf16 %v93_v8, %v92_v7  ;;  %v94_v10 = vld [vmem:[%s4078_s6 + $0x10] sm:$0xff]  ;;  %v95_v11 = vld [vmem:[%s4078_s6 + $0x18] sm:$0xff]  ;;  %3165 = vmatprep.subr.bf16.mxu0 %v3381_v12  ;;  %vm3382_vm1 = vmmov 0   ;;  %v3383_v13 = vmov 0.0   ;;  %v96_v15 = vld [vmem:[%s4078_s6 + $0x20] sm:$0xff]  ;;  %s3384_s25 = smov 126  }
   0x4   :  { %2937 = vmatprep.mubr.msk.f32.mxu0 %vm3382_vm1, %v3383_v13  ;;  %v3169_v14 = vpack.c.bf16 %v95_v11, %v94_v10  ;;  %2950 = vmatprep.subr.mxu1 %v3383_v13  ;;  %v97_v16 = vld [vmem:[%s4078_s6 + $0x28] sm:$0xff]  ;;  %v98_v18 = vld [vmem:[%s4078_s6 + $0x30] sm:$0xff]  ;;  %v99_v19 = vld [vmem:[%s4078_s6 + $0x38] sm:$0xff]  ;;  %s3385_s26 = smov 2   ;;  %vm200_vm2 = vcmask 130048   ;;  %v56_v47 = vshrl.u32 %v55_v46, 7 }
   0x5   :  { %3167 = vmatpush3.bf16.msra.mxu0 %v3166_v9  ;;  %2952 = vmatprep.mubr.msk.f32.mxu1 %vm3382_vm1, %v3383_v13  ;;  %v3172_v17 = vpack.c.bf16 %v97_v16, %v96_v15  ;;  %v3175_v20 = vpack.c.bf16 %v99_v19, %v98_v18  ;;  %v2710_v25 = vld [vmem:[%s4076_s4] ss:$0 sm:$0xff]  ;;  %v58_v48 = vand.u32 127, %v55_v46  ;;  %v3388_v51 = vmov -1e+30   ;;  %s3390_s18 = smov 48  }
   0x6   :  { %3168 = vmatprep.subr.bf16.mxu0 %v3381_v12  ;;  %v2711_v27 = vld [vmem:[%s4077_s5] ss:$0 sm:$0xff]  ;;  %vm277_vm4 = vcmask 64512   ;;  %s3391_s19 = smov 96   ;;  %v190_v15 = vld [vmem:[%s4080_s8 + $0x8] sm:$0xff]  ;;  %v191_v18 = vld [vmem:[%s4080_s8 + $0x10] sm:$0xff] }
   0x7   :  { %v2712_v30 = vld [vmem:[%s4079_s7] ss:$0 sm:$0xff]  ;;  %vm59_vm3 = vcmp.le.s32.totalorder %v58_v48, %v56_v47  ;;  %v192_v19 = vld [vmem:[%s4080_s8 + $0x18] sm:$0xff]  ;;  %s3392_s29 = smov 16   ;;  %s3393_s30 = smov 80  }
   0x8   :  { %v3535_v34 = vld [vmem:[%s4074_s2] sm:$0xff]  ;;  %s3386_s2 = smov 112   ;;  %v3567_v52 = vsel %vm59_vm3, 0.0, %v3388_v51 }
   0x9   :  { %3170 = vmatpush3.bf16.msra.mxu0 %v3169_v14  ;;  %v3540_v35 = vld [vmem:[%s4073_s1] sm:$0xff]  ;;  %s3387_s1 = smov 64  }
   0xa   :  { %3171 = vmatprep.subr.bf16.mxu0 %v3381_v12  ;;  %v3546_v38 = vld [vmem:[%s4075_s3] sm:$0xff]  ;;  %s3389_s3 = smov 32  }
   0xb   :  { %v189_v14 = vld [vmem:[%s4080_s8] sm:$0xff] }
   0xc   :  { %v3181_v16 = vpack.c.bf16 %v190_v15, %v189_v14 }
   0xd   :  { %3173 = vmatpush3.bf16.msra.mxu0 %v3172_v17 }
   0xe   :  { %3174 = vmatprep.subr.bf16.mxu0 %v3381_v12 }
  0x11   :  { %3176 = vmatpush3.bf16.msra.mxu0 %v3175_v20 }
  0x12   :  { %2940 = vmatprep.subr.mxu0 %v3383_v13 }
  0x90   :  { %v66_v2 = vpop.xlane.xlu0 %65 }
  0x91   :  { %v68_v3 = vmul.f32 0.015625, %v66_v2 }
  0x93   :  { %v69_v4 = vsub.f32 %v3478_v0, %v68_v3 }
  0x95   :  { %v70_v5 = vmul.f32 %v69_v4, %v69_v4 }
  0x97   :  { %v71_v6 = vsel %vm63_vm0, %v70_v5, 0.0 }
  0x98   :  { %72 = vadd.xlane.f32.xlu0 %v71_v6 }
 0x125   :  { %v73_v21 = vpop.xlane.xlu0 %72 }
 0x126   :  { %v74_v22 = vmul.f32 0.015625, %v73_v21  ;;  %v3178_v21 = vpack.c.bf16 %v192_v19, %v191_v18 }
 0x128   :  { %v75_v23 = vadd.f32 1e-05, %v74_v22 }
 0x12a   :  { %3307 = vrsqrt.f32 %v75_v23 }
 0x134   :  { %v3308_v24 = vpop.eup %3307 }
 0x135   :  { %v77_v26 = vmul.f32 %v3308_v24, %v69_v4 }
 0x137   :  { %v84_v28 = vmul.f32 %v2710_v25, %v77_v26 }
 0x139   :  { %v91_v29 = vadd.f32 %v2711_v27, %v84_v28 }
 0x13b   :  { %2938 = vmatmul.mubr.msk.f32.vlgmr.msra.gmra.mrb[0].mxu0 %vm63_vm0, %v91_v29 }
 0x13c   :  { %2942 = vmatprep.mubr.msk.f32.mxu0 %vm3382_vm1, %v3383_v13 }
 0x20e   :  { %v176_v31 = vpop.f32.mrb[0].mxu0 }
 0x20f   :  { %v177_v32 = vadd.f32 %v2712_v30, %v176_v31  ;;  %v2939_v33 = vpop.f32.mrb[1].mxu0 }
 0x211   :  { %180 = vrot.lane.b32.xlu1 %v177_v32, %s3384_s25  ;;  %v184_v39 = vmul.f32 %v177_v32, %v3540_v35 }
 0x215   :  { %182 = vrot.lane.b32.xlu1 %v177_v32, %s3385_s26 }
 0x283   :  { %v181_v36 = vpop.permute.xlu1 %180 }
 0x284   :  { %v185_v37 = vmul.f32 %v181_v36, %v3535_v34 }
 0x286   :  { %v186_v41 = vadd.f32 %v185_v37, %v184_v39 }
 0x287   :  { %v183_v40 = vpop.permute.xlu1 %182 }
 0x288   :  { %v187_v42 = vmul.f32 %v183_v40, %v3546_v38 }
 0x28a   :  { %v3550_v43 = vadd.f32 %v187_v42, %v186_v41 }
 0x28c   :  { %365 = vrot.lane.b32.xlu1 %v3550_v43, %s3386_s2  ;;  %198 = vrot.lane.b32.xlu0 %v3550_v43, %s3387_s1 }
 0x2fe   :  { %v199_v44 = vpop.permute.xlu0 %198  ;;  %v366_v45 = vpop.permute.xlu1 %365 }
 0x2ff   :  { %2941 = vmatpush3.xpose.msk.msra.mxu0 %vm200_vm2, %v199_v44  ;;  %2951 = vmatpush3.xpose.msk.msra.mxu1 %vm200_vm2, %v199_v44 }
 0x300   :  { %2955 = vmatprep.subr.mxu1 %v3383_v13  ;;  %2945 = vmatprep.subr.mxu0 %v3383_v13 }
 0x302   :  { %2943 = vmatmul.mubr.msk.f32.vlgmr.msra.gmra.mrb[2].mxu0 %vm200_vm2, %v3550_v43  ;;  %2953 = vmatmul.mubr.msk.f32.vlgmr.msra.gmra.mrb[0].mxu1 %vm200_vm2, %v366_v45 }
 0x303   :  { %2957 = vmatprep.mubr.msk.f32.mxu1 %vm3382_vm1, %v3383_v13  ;;  %2947 = vmatprep.mubr.msk.f32.mxu0 %vm3382_vm1, %v3383_v13 }
 0x3d5   :  { %v271_v49 = vpop.f32.mrb[2].mxu0  ;;  %v435_v50 = vpop.f32.mrb[0].mxu1 }
 0x3d6   :  { %v439_v53 = vmul.f32 0.25, %v435_v50  ;;  %v2944_v54 = vpop.f32.mrb[3].mxu0  ;;  %v2954_v55 = vpop.f32.mrb[1].mxu1  ;;  %v275_v62 = vmul.f32 0.25, %v271_v49  ;;  %v193_v49 = vld [vmem:[%s4080_s8 + $0x20] sm:$0xff]  ;;  %v194_v50 = vld [vmem:[%s4080_s8 + $0x28] sm:$0xff] }
 0x3d7   :  { %v3184_v51 = vpack.c.bf16 %v194_v50, %v193_v49  ;;  %v1189_v49 = vld [vmem:[%s4083_s11 + $0x68] sm:$0xff]  ;;  %v1191_v50 = vld [vmem:[%s4083_s11 + $0x78] sm:$0xff] }
 0x3d8   :  { %v440_v56 = vadd.f32 %v439_v53, %v3567_v52  ;;  %v276_v2 = vadd.f32 %v275_v62, %v3567_v52 }
 0x3da   :  { %v441_v57 = vsel %vm277_vm4, %v440_v56, -inf  ;;  %v278_v3 = vsel %vm277_vm4, %v276_v2, -inf }
 0x3db   :  { %442 = vmax.xlane.f32.xlu1 %v441_v57 }
 0x3ec   :  { %289 = vrot.lane.b32.xlu1 %v3550_v43, %s3389_s3 }
 0x3f0   :  { %673 = vrot.lane.b32.xlu1 %v3550_v43, %s3390_s18 }
 0x468   :  { %v443_v58 = vpop.xlane.xlu1 %442 }
 0x469   :  { %v444_v59 = vsub.f32 %v440_v56, %v443_v58 }
 0x46b   :  { %v445_v60 = vmul.f32 1.442695, %v444_v59 }
 0x46c   :  { %v290_v61 = vpop.permute.xlu1 %289 }
 0x46d   :  { %3309 = vpow2.f32 %v445_v60  ;;  %2946 = vmatpush3.msra.mxu0 %v290_v61  ;;  %2956 = vmatpush3.msra.mxu1 %v290_v61 }
 0x46e   :  { %3177 = vmatprep.subr.bf16.mxu0 %v3381_v12  ;;  %3180 = vmatprep.subr.bf16.mxu1 %v3381_v12 }
 0x470   :  { %v674_v24 = vpop.permute.xlu1 %673 }
 0x477   :  { %v3310_v63 = vpop.eup %3309 }
 0x478   :  { %v447_v1 = vsel %vm277_vm4, %v3310_v63, 0.0 }
 0x479   :  { %448 = vadd.xlane.f32.xlu0 %v447_v1 }
 0x47d   :  { %279 = vmax.xlane.f32.xlu0 %v278_v3 }
 0x506   :  { %v449_v4 = vpop.xlane.xlu0 %448 }
 0x507   :  { %3311 = vrcp.f32 %v449_v4 }
 0x50a   :  { %v280_v5 = vpop.xlane.xlu0 %279 }
 0x50b   :  { %v281_v6 = vsub.f32 %v276_v2, %v280_v5  ;;  %v195_v5 = vld [vmem:[%s4080_s8 + $0x30] sm:$0xff] }
 0x50d   :  { %v282_v7 = vmul.f32 1.442695, %v281_v6  ;;  %v196_v6 = vld [vmem:[%s4080_s8 + $0x38] sm:$0xff] }
 0x50f   :  { %3313 = vpow2.f32 %v282_v7  ;;  %v3187_v7 = vpack.c.bf16 %v196_v6, %v195_v5  ;;  %v1277_v5 = vld [vmem:[%s4084_s12 + $0x18] sm:$0xff] }
 0x511   :  { %v3312_v8 = vpop.eup %3311 }
 0x512   :  { %v451_v9 = vmul.f32 %v3312_v8, %v3310_v63 }
 0x514   :  { %2958 = vmatmul.mubr.msk.f32.vlgmr.msra.gmra.mrb[2].mxu1 %vm277_vm4, %v451_v9 }
 0x515   :  { %2971 = vmatprep.mubr.msk.f32.mxu1 %vm3382_vm1, %v3383_v13  ;;  %3182 = vmatpush3.bf16.msra.mxu1 %v3181_v16 }
 0x516   :  { %2979 = vmatprep.subr.mxu1 %v3383_v13 }
 0x519   :  { %v3314_v10 = vpop.eup %3313 }
 0x51a   :  { %v284_v11 = vsel %vm277_vm4, %v3314_v10, 0.0 }
 0x51b   :  { %285 = vadd.xlane.f32.xlu0 %v284_v11 }
 0x531   :  { %671 = vrot.lane.b32.xlu0 %v3550_v43, %s3391_s19 }
 0x5a8   :  { %v286_v17 = vpop.xlane.xlu0 %285 }
 0x5a9   :  { %3315 = vrcp.f32 %v286_v17 }
 0x5ac   :  { %v672_v26 = vpop.permute.xlu0 %671 }
 0x5b3   :  { %v3316_v20 = vpop.eup %3315 }
 0x5b4   :  { %v288_v22 = vmul.f32 %v3316_v20, %v3314_v10 }
 0x5b6   :  { %2948 = vmatmul.mubr.msk.f32.vlgmr.msra.gmra.mrb[4].mxu0 %vm277_vm4, %v288_v22 }
 0x5b7   :  { %3179 = vmatpush3.bf16.msra.mxu0 %v3178_v21  ;;  %2964 = vmatprep.mubr.msk.f32.mxu0 %vm3382_vm1, %v3383_v13 }
 0x5b8   :  { %2974 = vmatprep.subr.mxu0 %v3383_v13 }
 0x5e7   :  { %v521_v23 = vpop.f32.mrb[2].mxu1 }
 0x5e8   :  { %v2959_v25 = vpop.f32.mrb[3].mxu1  ;;  %2965 = vmatmul.mubr.msk.f32.vlgmr.msra.gmra.mrb[6].mxu0 %vm200_vm2, %v521_v23 }
 0x5e9   :  { %2975 = vmatpush3.xpose.msk.msra.mxu0 %vm200_vm2, %v674_v24  ;;  %2976 = vmatprep.mubr.msk.f32.mxu0 %vm3382_vm1, %v3383_v13 }
 0x5ea   :  { %3183 = vmatprep.subr.bf16.mxu0 %v3381_v12 }
 0x5ec   :  { %2977 = vmatmul.mubr.msk.f32.vlgmr.msra.gmra.mrb[8].mxu0 %vm200_vm2, %v672_v26 }
 0x5ed   :  { %2988 = vmatprep.mubr.msk.f32.mxu0 %vm3382_vm1, %v3383_v13  ;;  %3185 = vmatpush3.bf16.msra.mxu0 %v3184_v51  ;;  %v1188_v51 = vld [vmem:[%s4083_s11 + $0x60] sm:$0xff] }
 0x5ee   :  { %2996 = vmatprep.subr.mxu0 %v3383_v13 }
 0x689   :  { %v361_v27 = vpop.f32.mrb[4].mxu0 }
 0x68a   :  { %v2949_v28 = vpop.f32.mrb[5].mxu0  ;;  %2972 = vmatmul.mubr.msk.f32.vlgmr.msra.gmra.mrb[4].mxu1 %vm200_vm2, %v361_v27 }
 0x68b   :  { %2981 = vmatprep.mubr.msk.f32.mxu1 %vm3382_vm1, %v3383_v13  ;;  %v1177_v28 = vld [vmem:[%s4083_s11 + $0x8] sm:$0xff] }
 0x6bb   :  { %v594_v29 = vpop.f32.mrb[6].mxu0 }
 0x6bc   :  { %v2966_v30 = vpop.f32.mrb[7].mxu0 }
 0x6bd   :  { %v1176_v30 = vld [vmem:[%s4083_s11] sm:$0xff] }
 0x6bf   :  { %v745_v31 = vpop.f32.mrb[8].mxu0 }
 0x6c0   :  { %v749_v32 = vmul.f32 0.25, %v745_v31  ;;  %v2978_v33 = vpop.f32.mrb[9].mxu0  ;;  %v1178_v31 = vld [vmem:[%s4083_s11 + $0x10] sm:$0xff] }
 0x6c1   :  { %v1181_v33 = vld [vmem:[%s4083_s11 + $0x28] sm:$0xff] }
 0x6c2   :  { %v750_v36 = vadd.f32 %v749_v32, %v3567_v52  ;;  %v3191_v32 = vpack.c.bf16 %v1178_v31, %v1176_v30 }
 0x6c4   :  { %v751_v37 = vsel %vm277_vm4, %v750_v36, -inf }
 0x6c5   :  { %752 = vmax.xlane.f32.xlu1 %v751_v37 }
 0x6d6   :  { %762 = vrot.lane.b32.xlu1 %v3550_v43, %s3392_s29 }
 0x752   :  { %v753_v39 = vpop.xlane.xlu1 %752 }
 0x753   :  { %v754_v40 = vsub.f32 %v750_v36, %v753_v39  ;;  %v1183_v36 = vld [vmem:[%s4083_s11 + $0x38] sm:$0xff]  ;;  %v1180_v39 = vld [vmem:[%s4083_s11 + $0x20] sm:$0xff] }
 0x754   :  { %v3193_v37 = vpack.c.bf16 %v1183_v36, %v1181_v33 }
 0x755   :  { %v755_v41 = vmul.f32 1.442695, %v754_v40  ;;  %v1182_v40 = vld [vmem:[%s4083_s11 + $0x30] sm:$0xff] }
 0x756   :  { %v763_v42 = vpop.permute.xlu1 %762 }
 0x757   :  { %3317 = vpow2.f32 %v755_v41  ;;  %2980 = vmatpush3.msra.mxu1 %v763_v42  ;;  %v3195_v41 = vpack.c.bf16 %v1182_v40, %v1180_v39 }
 0x758   :  { %2991 = vmatprep.subr.mxu1 %v3383_v13 }
 0x75d   :  { %v667_v44 = vpop.f32.mrb[4].mxu1 }
 0x75e   :  { %v668_v45 = vadd.f32 %v667_v44, %v594_v29  ;;  %v2973_v46 = vpop.f32.mrb[5].mxu1  ;;  %v1187_v44 = vld [vmem:[%s4083_s11 + $0x58] sm:$0xff] }
 0x75f   :  { %v1184_v46 = vld [vmem:[%s4083_s11 + $0x40] sm:$0xff] }
 0x761   :  { %v3318_v47 = vpop.eup %3317 }
 0x762   :  { %v757_v48 = vsel %vm277_vm4, %v3318_v47, 0.0 }
 0x763   :  { %758 = vadd.xlane.f32.xlu0 %v757_v48 }
 0x779   :  { %912 = vrot.lane.b32.xlu0 %v3550_v43, %s3393_s30 }
 0x7f0   :  { %v759_v53 = vpop.xlane.xlu0 %758 }
 0x7f1   :  { %3319 = vrcp.f32 %v759_v53  ;;  %v3201_v53 = vpack.c.bf16 %v1191_v50, %v1189_v49  ;;  %v2740_v50 = vld [vmem:[%s4078_s6 + $0x50] sm:$0xff] }
 0x7f4   :  { %v913_v43 = vpop.permute.xlu0 %912 }
 0x7fb   :  { %v3320_v54 = vpop.eup %3319 }
 0x7fc   :  { %v761_v55 = vmul.f32 %v3320_v54, %v3318_v47  ;;  %v1186_v47 = vld [vmem:[%s4083_s11 + $0x50] sm:$0xff] }
 0x7fd   :  { %v3199_v48 = vpack.c.bf16 %v1186_v47, %v1184_v46  ;;  %v1190_v54 = vld [vmem:[%s4083_s11 + $0x70] sm:$0xff] }
 0x7fe   :  { %2982 = vmatmul.mubr.msk.f32.vlgmr.msra.gmra.mrb[6].mxu1 %vm277_vm4, %v761_v55  ;;  %v3203_v55 = vpack.c.bf16 %v1190_v54, %v1188_v51  ;;  %v2741_v51 = vld [vmem:[%s4078_s6 + $0x58] sm:$0xff]  ;;  %v2742_v54 = vld [vmem:[%s4078_s6 + $0x60] sm:$0xff] }
 0x7ff   :  { %2992 = vmatpush3.xpose.msk.msra.mxu1 %vm200_vm2, %v674_v24  ;;  %2993 = vmatprep.mubr.msk.f32.mxu1 %vm3382_vm1, %v3383_v13 }
 0x800   :  { %3186 = vmatprep.subr.bf16.mxu1 %v3381_v12 }
 0x802   :  { %2994 = vmatmul.mubr.msk.f32.vlgmr.msra.gmra.mrb[8].mxu1 %vm200_vm2, %v913_v43 }
 0x803   :  { %3005 = vmatprep.mubr.msk.f32.mxu1 %vm3382_vm1, %v3383_v13  ;;  %3188 = vmatpush3.bf16.msra.mxu1 %v3187_v7  ;;  %v1278_v7 = vld [vmem:[%s4084_s12 + $0x20] sm:$0xff] }
 0x804   :  { %3205 = vmatprep.subr.bf16.mxu1 %v3381_v12 }
 0x8d1   :  { %v834_v56 = vpop.f32.mrb[6].mxu1 }
 0x8d2   :  { %v2983_v57 = vpop.f32.mrb[7].mxu1  ;;  %2989 = vmatmul.mubr.msk.f32.vlgmr.msra.gmra.mrb[10].mxu0 %vm200_vm2, %v834_v56 }
 0x8d3   :  { %2997 = vmatpush3.msra.mxu0 %v763_v42  ;;  %2998 = vmatprep.mubr.msk.f32.mxu0 %vm3382_vm1, %v3383_v13  ;;  %v1185_v42 = vld [vmem:[%s4083_s11 + $0x48] sm:$0xff] }
 0x8d5   :  { %v982_v58 = vpop.f32.mrb[8].mxu1 }
 0x8d6   :  { %v986_v59 = vmul.f32 0.25, %v982_v58  ;;  %v2995_v60 = vpop.f32.mrb[9].mxu1 }
 0x8d8   :  { %v987_v61 = vadd.f32 %v986_v59, %v3567_v52  ;;  %v2730_v59 = vld [vmem:[%s4081_s9] ss:$0 sm:$0xff] }
 0x8da   :  { %v988_v62 = vsel %vm277_vm4, %v987_v61, -inf }
 0x8db   :  { %989 = vmax.xlane.f32.xlu1 %v988_v62 }
 0x968   :  { %v990_v63 = vpop.xlane.xlu1 %989 }
 0x969   :  { %v991_v1 = vsub.f32 %v987_v61, %v990_v63  ;;  %v2731_v61 = vld [vmem:[%s4082_s10] ss:$0 sm:$0xff] }
 0x96b   :  { %v992_v2 = vmul.f32 1.442695, %v991_v1  ;;  %v1274_v1 = vld [vmem:[%s4084_s12] sm:$0xff] }
 0x96d   :  { %3321 = vpow2.f32 %v992_v2  ;;  %v1275_v2 = vld [vmem:[%s4084_s12 + $0x8] sm:$0xff] }
 0x977   :  { %v3322_v3 = vpop.eup %3321 }
 0x978   :  { %v994_v4 = vsel %vm277_vm4, %v3322_v3, 0.0 }
 0x979   :  { %995 = vadd.xlane.f32.xlu0 %v994_v4  ;;  %v1276_v4 = vld [vmem:[%s4084_s12 + $0x10] sm:$0xff] }
 0x97a   :  { %v3209_v6 = vpack.c.bf16 %v1277_v5, %v1276_v4  ;;  %v2747_v5 = vld [vmem:[%s4079_s7 + $0x1] ss:$0 sm:$0xff] }
 0x9a5   :  { %v907_v8 = vpop.f32.mrb[10].mxu0 }
 0x9a6   :  { %v911_v9 = vadd.f32 %v907_v8, %v668_v45  ;;  %v2990_v10 = vpop.f32.mrb[11].mxu0  ;;  %v3197_v45 = vpack.c.bf16 %v1187_v44, %v1185_v42  ;;  %v1279_v8 = vld [vmem:[%s4084_s12 + $0x28] sm:$0xff] }
 0x9a7   :  { %v1280_v10 = vld [vmem:[%s4084_s12 + $0x30] sm:$0xff] }
 0xa06   :  { %v996_v11 = vpop.xlane.xlu0 %995 }
 0xa07   :  { %3323 = vrcp.f32 %v996_v11  ;;  %v1281_v11 = vld [vmem:[%s4084_s12 + $0x38] sm:$0xff] }
 0xa11   :  { %v3324_v14 = vpop.eup %3323 }
 0xa12   :  { %v998_v15 = vmul.f32 %v3324_v14, %v3322_v3  ;;  %v3206_v3 = vpack.c.bf16 %v1275_v2, %v1274_v1  ;;  %v3215_v14 = vpack.c.bf16 %v1281_v11, %v1280_v10  ;;  %v2737_v2 = vld [vmem:[%s4077_s5 + $0x1] ss:$0 sm:$0xff] }
 0xa14   :  { %2999 = vmatmul.mubr.msk.f32.vlgmr.msra.gmra.mrb[12].mxu0 %vm277_vm4, %v998_v15  ;;  %v1282_v15 = vld [vmem:[%s4084_s12 + $0x40] sm:$0xff] }
 0xa15   :  { %1259 = vmatprep.mubr.f32.mxu0 %v3383_v13 }
 0xae7   :  { %v1068_v16 = vpop.f32.mrb[12].mxu0 }
 0xae8   :  { %v3000_v17 = vpop.f32.mrb[13].mxu0  ;;  %3006 = vmatmul.mubr.msk.f32.vlgmr.msra.gmra.mrb[10].mxu1 %vm200_vm2, %v1068_v16  ;;  %v1283_v16 = vld [vmem:[%s4084_s12 + $0x48] sm:$0xff] }
 0xae9   :  { %3040 = vmatprep.mubr.msk.f32.mxu1 %vm3382_vm1, %v3383_v13  ;;  %3207 = vmatpush3.bf16.msra.mxu1 %v3206_v3  ;;  %v3218_v17 = vpack.c.bf16 %v1283_v16, %v1282_v15 }
 0xaea   :  { %3208 = vmatprep.subr.bf16.mxu1 %v3381_v12 }
 0xaed   :  { %3210 = vmatpush3.bf16.msra.mxu1 %v3209_v6 }
 0xaee   :  { %3211 = vmatprep.subr.bf16.mxu1 %v3381_v12 }
 0xbbb   :  { %v1141_v18 = vpop.f32.mrb[10].mxu1 }
 0xbbc   :  { %v1145_v19 = vadd.f32 %v1141_v18, %v911_v9  ;;  %v3007_v20 = vpop.f32.mrb[11].mxu1  ;;  %v3212_v9 = vpack.c.bf16 %v1279_v8, %v1278_v7  ;;  %v1284_v18 = vld [vmem:[%s4084_s12 + $0x50] sm:$0xff] }
 0xbbe   :  { %v3656_v21 = vadd.f32 %v1145_v19, %v3478_v0  ;;  %v1179_v0 = vld [vmem:[%s4083_s11 + $0x18] sm:$0xff]  ;;  %3213 = vmatpush3.bf16.msra.mxu1 %v3212_v9 }
 0xbbf   :  { %v3189_v29 = vpack.c.bf16 %v1179_v0, %v1177_v28  ;;  %3214 = vmatprep.subr.bf16.mxu1 %v3381_v12  ;;  %v1285_v19 = vld [vmem:[%s4084_s12 + $0x58] sm:$0xff] }
 0xbc0   :  { %v1149_v22 = vsel %vm63_vm0, %v3656_v21, 0.0  ;;  %v3221_v20 = vpack.c.bf16 %v1285_v19, %v1284_v18 }
 0xbc1   :  { %1150 = vadd.xlane.f32.xlu1 %v1149_v22  ;;  %3190 = vmatprep.subr.bf16.mxu0 %v3189_v29  ;;  %v1286_v22 = vld [vmem:[%s4084_s12 + $0x60] sm:$0xff] }
 0xbc2   :  { %3192 = vmatpush1.bf16.msra.mxu0 %v3191_v32  ;;  %3216 = vmatpush3.bf16.msra.mxu1 %v3215_v14 }
 0xbc3   :  { %3194 = vmatprep.subr.bf16.mxu0 %v3193_v37  ;;  %3217 = vmatprep.subr.bf16.mxu1 %v3381_v12 }
 0xbc6   :  { %3196 = vmatpush1.bf16.msra.mxu0 %v3195_v41  ;;  %3219 = vmatpush3.bf16.msra.mxu1 %v3218_v17 }
 0xbc7   :  { %3198 = vmatprep.subr.bf16.mxu0 %v3197_v45  ;;  %3220 = vmatprep.subr.bf16.mxu1 %v3381_v12 }
 0xbca   :  { %3200 = vmatpush1.bf16.msra.mxu0 %v3199_v48  ;;  %3222 = vmatpush3.bf16.msra.mxu1 %v3221_v20  ;;  %v2738_v48 = vld [vmem:[%s4078_s6 + $0x40] sm:$0xff] }
 0xbcb   :  { %3202 = vmatprep.subr.bf16.mxu0 %v3201_v53  ;;  %3223 = vmatprep.subr.bf16.mxu1 %v3381_v12  ;;  %v3233_v53 = vpack.c.bf16 %v2741_v51, %v2740_v50  ;;  %v2750_v50 = vld [vmem:[%s4080_s8 + $0x48] sm:$0xff] }
 0xbce   :  { %3204 = vmatpush1.bf16.msra.mxu0 %v3203_v55  ;;  %v2743_v55 = vld [vmem:[%s4078_s6 + $0x68] sm:$0xff] }
 0xbcf   :  { %3229 = vmatprep.subr.bf16.mxu0 %v3381_v12 }
 0xc4e   :  { %v1151_v23 = vpop.xlane.xlu1 %1150 }
 0xc4f   :  { %v1152_v24 = vmul.f32 0.015625, %v1151_v23  ;;  %v1287_v23 = vld [vmem:[%s4084_s12 + $0x68] sm:$0xff] }
 0xc51   :  { %v1153_v25 = vsub.f32 %v3656_v21, %v1152_v24  ;;  %v3224_v24 = vpack.c.bf16 %v1287_v23, %v1286_v22 }
 0xc53   :  { %v1154_v26 = vmul.f32 %v1153_v25, %v1153_v25  ;;  %3225 = vmatpush3.bf16.msra.mxu1 %v3224_v24 }
 0xc54   :  { %3226 = vmatprep.subr.bf16.mxu1 %v3381_v12 }
 0xc55   :  { %v1155_v27 = vsel %vm63_vm0, %v1154_v26, 0.0  ;;  %v1289_v26 = vld [vmem:[%s4084_s12 + $0x78] sm:$0xff] }
 0xc56   :  { %1156 = vadd.xlane.f32.xlu1 %v1155_v27 }
 0xce3   :  { %v1157_v43 = vpop.xlane.xlu1 %1156 }
 0xce4   :  { %v1158_v56 = vmul.f32 0.015625, %v1157_v43  ;;  %v3236_v43 = vpack.c.bf16 %v2743_v55, %v2742_v54 }
 0xce6   :  { %v1159_v57 = vadd.f32 1e-05, %v1158_v56  ;;  %v2744_v56 = vld [vmem:[%s4078_s6 + $0x70] sm:$0xff] }
 0xce8   :  { %3325 = vrsqrt.f32 %v1159_v57  ;;  %v2745_v57 = vld [vmem:[%s4078_s6 + $0x78] sm:$0xff] }
 0xcf2   :  { %v3326_v58 = vpop.eup %3325 }
 0xcf3   :  { %v1161_v60 = vmul.f32 %v3326_v58, %v1153_v25  ;;  %v1288_v25 = vld [vmem:[%s4084_s12 + $0x70] sm:$0xff]  ;;  %v3239_v58 = vpack.c.bf16 %v2745_v57, %v2744_v56 }
 0xcf4   :  { %v3227_v27 = vpack.c.bf16 %v1289_v26, %v1288_v25 }
 0xcf5   :  { %v1168_v62 = vmul.f32 %v2730_v59, %v1161_v60 }
 0xcf6   :  { %3228 = vmatpush3.bf16.msra.mxu1 %v3227_v27 }
 0xcf7   :  { %v1175_v63 = vadd.f32 %v2731_v61, %v1168_v62  ;;  %3067 = vmatprep.subr.mxu1 %v3383_v13 }
 0xcf9   :  { %2732 = vmatmul.mubr.msk.f32.vlgmr.msra.gmra.mrb[14].mxu0 %vm63_vm0, %v1175_v63  ;;  %v2736_v63 = vld [vmem:[%s4076_s4 + $0x1] ss:$0 sm:$0xff] }
 0xcfa   :  { %3059 = vmatprep.mubr.msk.f32.mxu0 %vm3382_vm1, %v3383_v13 }
 0xdcc   :  { %v1261_v28 = vpop.f32.mrb[14].mxu0 }
 0xdcd   :  { %v2733_v0 = vmul.f32 -1.442695, %v1261_v28  ;;  %v1263_v29 = vpop.f32.mrb[15].mxu0 }
 0xdcf   :  { %3327 = vpow2.f32 %v2733_v0 }
 0xdd9   :  { %v3328_v30 = vpop.eup %3327 }
 0xdda   :  { %v1269_v31 = vadd.f32 1.0, %v3328_v30 }
 0xddc   :  { %3329 = vrcp.f32 %v1269_v31 }
 0xde6   :  { %v3330_v32 = vpop.eup %3329 }
 0xde7   :  { %v1272_v33 = vmul.f32 %v3330_v32, %v1261_v28 }
 0xde9   :  { %v1273_v36 = vmul.f32 %v1272_v33, %v1263_v29 }
 0xdeb   :  { %3041 = vmatmul.mubr.f32.vlgmr.msra.gmra.mrb[12].mxu1 %v1273_v36 }
 0xdec   :  { %3069 = vmatprep.mubr.msk.f32.mxu1 %vm3382_vm1, %v3383_v13 }
 0xebe   :  { %v1356_v37 = vpop.f32.mrb[12].mxu1 }
 0xebf   :  { %v3779_v39 = vadd.f32 %v1356_v37, %v3656_v21  ;;  %v3042_v40 = vpop.f32.mrb[13].mxu1  ;;  %v2739_v21 = vld [vmem:[%s4078_s6 + $0x48] sm:$0xff] }
 0xec0   :  { %v3230_v49 = vpack.c.bf16 %v2739_v21, %v2738_v48 }
 0xec1   :  { %v1365_v41 = vsel %vm63_vm0, %v3779_v39, 0.0 }
 0xec2   :  { %1366 = vadd.xlane.f32.xlu1 %v1365_v41  ;;  %3231 = vmatpush3.bf16.msra.mxu0 %v3230_v49  ;;  %v2749_v49 = vld [vmem:[%s4080_s8 + $0x40] sm:$0xff] }
 0xec3   :  { %3232 = vmatprep.subr.bf16.mxu0 %v3381_v12 }
 0xec6   :  { %3234 = vmatpush3.bf16.msra.mxu0 %v3233_v53  ;;  %v3245_v53 = vpack.c.bf16 %v2750_v50, %v2749_v49 }
 0xec7   :  { %3235 = vmatprep.subr.bf16.mxu0 %v3381_v12 }
 0xeca   :  { %3237 = vmatpush3.bf16.msra.mxu0 %v3236_v43 }
 0xecb   :  { %3238 = vmatprep.subr.bf16.mxu0 %v3381_v12 }
 0xece   :  { %3240 = vmatpush3.bf16.msra.mxu0 %v3239_v58 }
 0xecf   :  { %3062 = vmatprep.subr.mxu0 %v3383_v13 }
 0xf4f   :  { %v1367_v42 = vpop.xlane.xlu1 %1366 }
 0xf50   :  { %v1368_v44 = vmul.f32 0.015625, %v1367_v42  ;;  %v2751_v42 = vld [vmem:[%s4080_s8 + $0x50] sm:$0xff] }
 0xf52   :  { %v1369_v45 = vsub.f32 %v3779_v39, %v1368_v44  ;;  %v2752_v44 = vld [vmem:[%s4080_s8 + $0x58] sm:$0xff] }
 0xf54   :  { %v1370_v46 = vmul.f32 %v1369_v45, %v1369_v45 }
 0xf56   :  { %v1371_v47 = vsel %vm63_vm0, %v1370_v46, 0.0 }
 0xf57   :  { %1372 = vadd.xlane.f32.xlu1 %v1371_v47 }
 0xfe4   :  { %v1373_v59 = vpop.xlane.xlu1 %1372 }
 0xfe5   :  { %v1374_v60 = vmul.f32 0.015625, %v1373_v59 }
 0xfe7   :  { %v1375_v61 = vadd.f32 1e-05, %v1374_v60 }
 0xfe9   :  { %3331 = vrsqrt.f32 %v1375_v61 }
 0xff3   :  { %v3332_v62 = vpop.eup %3331 }
 0xff4   :  { %v1377_v1 = vmul.f32 %v3332_v62, %v1369_v45  ;;  %v3242_v45 = vpack.c.bf16 %v2752_v44, %v2751_v42 }
 0xff6   :  { %v1384_v3 = vmul.f32 %v2736_v63, %v1377_v1 }
 0xff8   :  { %v1391_v4 = vadd.f32 %v2737_v2, %v1384_v3 }
 0xffa   :  { %3060 = vmatmul.mubr.msk.f32.vlgmr.msra.gmra.mrb[16].mxu0 %vm63_vm0, %v1391_v4 }
 0xffb   :  { %3064 = vmatprep.mubr.msk.f32.mxu0 %vm3382_vm1, %v3383_v13 }
0x10cd   :  { %v1478_v6 = vpop.f32.mrb[16].mxu0 }
0x10ce   :  { %v1479_v7 = vadd.f32 %v2747_v5, %v1478_v6  ;;  %v3061_v8 = vpop.f32.mrb[17].mxu0 }
0x10d0   :  { %1484 = vrot.lane.b32.xlu0 %v1479_v7, %s3385_s26  ;;  %1482 = vrot.lane.b32.xlu1 %v1479_v7, %s3384_s25  ;;  %v1486_v11 = vmul.f32 %v1479_v7, %v3540_v35 }
0x1142   :  { %v1485_v9 = vpop.permute.xlu0 %1484  ;;  %v1483_v10 = vpop.permute.xlu1 %1482 }
0x1143   :  { %v1487_v14 = vmul.f32 %v1483_v10, %v3535_v34  ;;  %v1489_v15 = vmul.f32 %v1485_v9, %v3546_v38 }
0x1145   :  { %v1488_v16 = vadd.f32 %v1487_v14, %v1486_v11  ;;  %v2753_v14 = vld [vmem:[%s4080_s8 + $0x60] sm:$0xff] }
0x1147   :  { %v3830_v17 = vadd.f32 %v1489_v15, %v1488_v16  ;;  %v2754_v15 = vld [vmem:[%s4080_s8 + $0x68] sm:$0xff] }
0x1148   :  { %v3248_v16 = vpack.c.bf16 %v2754_v15, %v2753_v14  ;;  %v2791_v14 = vld [vmem:[%s4083_s11 + $0xf0] sm:$0xff] }
0x1149   :  { %1501 = vrot.lane.b32.xlu1 %v3830_v17, %s3387_s1 }
0x114d   :  { %1666 = vrot.lane.b32.xlu1 %v3830_v17, %s3386_s2 }
0x11bb   :  { %v1502_v18 = vpop.permute.xlu1 %1501 }
0x11bc   :  { %3063 = vmatpush3.xpose.msk.msra.mxu0 %vm200_vm2, %v1502_v18 }
0x11bd   :  { %3072 = vmatprep.subr.mxu0 %v3383_v13 }
0x11bf   :  { %3065 = vmatmul.mubr.msk.f32.vlgmr.msra.gmra.mrb[18].mxu0 %vm200_vm2, %v3830_v17  ;;  %v1667_v34 = vpop.permute.xlu1 %1666 }
0x11c0   :  { %3073 = vmatpush3.xpose.msk.msra.mxu0 %vm200_vm2, %v1502_v18  ;;  %3074 = vmatprep.mubr.msk.f32.mxu0 %vm3382_vm1, %v3383_v13 }
0x11c1   :  { %3241 = vmatprep.subr.bf16.mxu0 %v3381_v12 }
0x11c3   :  { %3075 = vmatmul.mubr.msk.f32.vlgmr.msra.gmra.mrb[20].mxu0 %vm200_vm2, %v1667_v34 }
0x11c4   :  { %3086 = vmatprep.mubr.msk.f32.mxu0 %vm3382_vm1, %v3383_v13  ;;  %3243 = vmatpush3.bf16.msra.mxu0 %v3242_v45 }
0x11c5   :  { %3096 = vmatprep.subr.mxu0 %v3383_v13 }
0x1292   :  { %v1573_v35 = vpop.f32.mrb[18].mxu0 }
0x1293   :  { %v1577_v38 = vmul.f32 0.25, %v1573_v35  ;;  %v3066_v19 = vpop.f32.mrb[19].mxu0 }
0x1295   :  { %v1578_v20 = vadd.f32 %v1577_v38, %v3567_v52 }
0x1296   :  { %v1736_v22 = vpop.f32.mrb[20].mxu0 }
0x1297   :  { %v1740_v23 = vmul.f32 0.25, %v1736_v22  ;;  %v3076_v24 = vpop.f32.mrb[21].mxu0  ;;  %v1579_v25 = vsel %vm277_vm4, %v1578_v20, -inf }
0x1298   :  { %1580 = vmax.xlane.f32.xlu0 %v1579_v25 }
0x1299   :  { %v1741_v26 = vadd.f32 %v1740_v23, %v3567_v52 }
0x129b   :  { %v1742_v27 = vsel %vm277_vm4, %v1741_v26, -inf }
0x129c   :  { %1743 = vmax.xlane.f32.xlu1 %v1742_v27 }
0x12ad   :  { %1590 = vrot.lane.b32.xlu1 %v3830_v17, %s3389_s3 }
0x12b1   :  { %1972 = vrot.lane.b32.xlu1 %v3830_v17, %s3391_s19  ;;  %s3394_s19 = smov [#allocation2]  }
0x12b2   :  { %s2702_s24 = sshll.u32 %s3394_s19, 4  ;;  %s2703_s24 = int_to_ptr.vmem [resolvable:$true] %s2702_s24 }
0x12b3   :  { %s3357_s27 = scalar_lea.vmem %s2703_s24, 128  ;;  %p3362_p1 = scmp.lt.s32.totalorder %s2703_s24, %s2703_s24 }
0x12b4   :  { %p3358_p0 = scmp.ne.s32.totalorder %s2703_s24, %s3357_s27  ;;  %p3363_p2 = scmp.lt.s32.totalorder %s3357_s27, %s3357_s27 }
0x12b6   :  { %p3364_p3 = por %p3363_p2, %p3362_p1 }
0x12b8   :  { %p3365_p4 = pnand %p3364_p3, %p3358_p0 }
0x1325   :  { %v1581_v28 = vpop.xlane.xlu0 %1580 }
0x1326   :  { %v1582_v0 = vsub.f32 %v1578_v20, %v1581_v28 }
0x1328   :  { %v1583_v29 = vmul.f32 1.442695, %v1582_v0 }
0x1329   :  { %v1744_v30 = vpop.xlane.xlu1 %1743 }
0x132a   :  { %3333 = vpow2.f32 %v1583_v29  ;;  %v1745_v31 = vsub.f32 %v1741_v26, %v1744_v30 }
0x132c   :  { %v1746_v32 = vmul.f32 1.442695, %v1745_v31  ;;  %v2755_v31 = vld [vmem:[%s4080_s8 + $0x70] sm:$0xff] }
0x132d   :  { %v1591_v33 = vpop.permute.xlu1 %1590 }
0x132e   :  { %3335 = vpow2.f32 %v1746_v32  ;;  %3068 = vmatpush3.msra.mxu1 %v1591_v33  ;;  %v2756_v32 = vld [vmem:[%s4080_s8 + $0x78] sm:$0xff] }
0x132f   :  { %3077 = vmatprep.subr.mxu1 %v3383_v13 }
0x1331   :  { %v1973_v59 = vpop.permute.xlu1 %1972 }
0x1334   :  { %v3334_v36 = vpop.eup %3333 }
0x1335   :  { %v1585_v37 = vsel %vm277_vm4, %v3334_v36, 0.0 }
0x1336   :  { %1586 = vadd.xlane.f32.xlu0 %v1585_v37 }
0x1338   :  { %v3336_v40 = vpop.eup %3335 }
0x1339   :  { %v1748_v41 = vsel %vm277_vm4, %v3336_v40, 0.0 }
0x133a   :  { %1749 = vadd.xlane.f32.xlu0 %v1748_v41 }
0x1350   :  { %1974 = vrot.lane.b32.xlu0 %v3830_v17, %s3390_s18 }
0x13c3   :  { %v1587_v46 = vpop.xlane.xlu0 %1586 }
0x13c4   :  { %3337 = vrcp.f32 %v1587_v46 }
0x13c7   :  { %v1750_v47 = vpop.xlane.xlu0 %1749 }
0x13c8   :  { %3339 = vrcp.f32 %v1750_v47 }
0x13cb   :  { %v1975_v57 = vpop.permute.xlu0 %1974 }
0x13ce   :  { %v3338_v48 = vpop.eup %3337 }
0x13cf   :  { %v1589_v21 = vmul.f32 %v3338_v48, %v3334_v36 }
0x13d1   :  { %3070 = vmatmul.mubr.msk.f32.vlgmr.msra.gmra.mrb[14].mxu1 %vm277_vm4, %v1589_v21 }
0x13d2   :  { %v3340_v51 = vpop.eup %3339  ;;  %3078 = vmatpush3.msra.mxu1 %v1591_v33  ;;  %3079 = vmatprep.mubr.msk.f32.mxu1 %vm3382_vm1, %v3383_v13 }
0x13d3   :  { %v1752_v54 = vmul.f32 %v3340_v51, %v3336_v40  ;;  %3244 = vmatprep.subr.bf16.mxu1 %v3381_v12 }
0x13d5   :  { %3080 = vmatmul.mubr.msk.f32.vlgmr.msra.gmra.mrb[16].mxu1 %vm277_vm4, %v1752_v54 }
0x13d6   :  { %3246 = vmatpush3.bf16.msra.mxu1 %v3245_v53  ;;  %3093 = vmatprep.mubr.msk.f32.mxu1 %vm3382_vm1, %v3383_v13 }
0x13d7   :  { %3101 = vmatprep.subr.mxu1 %v3383_v13 }
0x14a4   :  { %v1662_v55 = vpop.f32.mrb[14].mxu1 }
0x14a5   :  { %v3071_v43 = vpop.f32.mrb[15].mxu1  ;;  %3094 = vmatmul.mubr.msk.f32.vlgmr.msra.gmra.mrb[18].mxu1 %vm200_vm2, %v1662_v55 }
0x14a6   :  { %3103 = vmatprep.mubr.msk.f32.mxu1 %vm3382_vm1, %v3383_v13 }
0x14a8   :  { %v1822_v56 = vpop.f32.mrb[16].mxu1 }
0x14a9   :  { %v3081_v58 = vpop.f32.mrb[17].mxu1  ;;  %3087 = vmatmul.mubr.msk.f32.vlgmr.msra.gmra.mrb[22].mxu0 %vm200_vm2, %v1822_v56  ;;  %v2777_v56 = vld [vmem:[%s4083_s11 + $0x80] sm:$0xff] }
0x14aa   :  { %3097 = vmatpush3.xpose.msk.msra.mxu0 %vm200_vm2, %v1975_v57  ;;  %3098 = vmatprep.mubr.msk.f32.mxu0 %vm3382_vm1, %v3383_v13 }
0x14ab   :  { %3247 = vmatprep.subr.bf16.mxu0 %v3381_v12 }
0x14ad   :  { %3099 = vmatmul.mubr.msk.f32.vlgmr.msra.gmra.mrb[24].mxu0 %vm200_vm2, %v1973_v59  ;;  %v2782_v59 = vld [vmem:[%s4083_s11 + $0xa8] sm:$0xff] }
0x14ae   :  { %3110 = vmatprep.mubr.msk.f32.mxu0 %vm3382_vm1, %v3383_v13  ;;  %3249 = vmatpush3.bf16.msra.mxu0 %v3248_v16 }
0x14af   :  { %3118 = vmatprep.subr.mxu0 %v3383_v13 }
0x1578   :  { %v1968_v60 = vpop.f32.mrb[18].mxu1 }
0x1579   :  { %v3095_v61 = vpop.f32.mrb[19].mxu1 }
0x157c   :  { %v1895_v62 = vpop.f32.mrb[22].mxu0 }
0x157d   :  { %v1969_v63 = vadd.f32 %v1968_v60, %v1895_v62  ;;  %v3088_v1 = vpop.f32.mrb[23].mxu0  ;;  %v2784_v60 = vld [vmem:[%s4083_s11 + $0xb8] sm:$0xff]  ;;  %v2781_v62 = vld [vmem:[%s4083_s11 + $0xa0] sm:$0xff] }
0x157e   :  { %v3257_v61 = vpack.c.bf16 %v2784_v60, %v2782_v59 }
0x1580   :  { %v2046_v2 = vpop.f32.mrb[24].mxu0 }
0x1581   :  { %v2050_v3 = vmul.f32 0.25, %v2046_v2  ;;  %v3100_v4 = vpop.f32.mrb[25].mxu0  ;;  %v2786_v2 = vld [vmem:[%s4083_s11 + $0xc8] sm:$0xff] }
0x1583   :  { %v2051_v5 = vadd.f32 %v2050_v3, %v3567_v52  ;;  %v2788_v3 = vld [vmem:[%s4083_s11 + $0xd8] sm:$0xff] }
0x1584   :  { %v3261_v4 = vpack.c.bf16 %v2788_v3, %v2786_v2 }
0x1585   :  { %v2052_v6 = vsel %vm277_vm4, %v2051_v5, -inf }
0x1586   :  { %2053 = vmax.xlane.f32.xlu1 %v2052_v6  ;;  %v2787_v6 = vld [vmem:[%s4083_s11 + $0xd0] sm:$0xff] }
0x1597   :  { %2213 = vrot.lane.b32.xlu1 %v3830_v17, %s3393_s30 }
0x1613   :  { %v2054_v7 = vpop.xlane.xlu1 %2053 }
0x1614   :  { %v2055_v8 = vsub.f32 %v2051_v5, %v2054_v7  ;;  %v2785_v5 = vld [vmem:[%s4083_s11 + $0xc0] sm:$0xff] }
0x1615   :  { %v3263_v7 = vpack.c.bf16 %v2787_v6, %v2785_v5  ;;  %v2812_v6 = vld [vmem:[%s4086_s14] ss:$0 sm:$0xff] }
0x1616   :  { %v2056_v9 = vmul.f32 1.442695, %v2055_v8  ;;  %v2790_v8 = vld [vmem:[%s4083_s11 + $0xe8] sm:$0xff] }
0x1617   :  { %v2214_v38 = vpop.permute.xlu1 %2213 }
0x1618   :  { %3341 = vpow2.f32 %v2056_v9  ;;  %v2792_v9 = vld [vmem:[%s4083_s11 + $0xf8] sm:$0xff] }
0x1622   :  { %v3342_v10 = vpop.eup %3341 }
0x1623   :  { %v2058_v11 = vsel %vm277_vm4, %v3342_v10, 0.0 }
0x1624   :  { %2059 = vadd.xlane.f32.xlu0 %v2058_v11  ;;  %v3265_v11 = vpack.c.bf16 %v2792_v9, %v2790_v8 }
0x163a   :  { %2063 = vrot.lane.b32.xlu0 %v3830_v17, %s3392_s29 }
0x16b1   :  { %v2060_v18 = vpop.xlane.xlu0 %2059 }
0x16b2   :  { %3343 = vrcp.f32 %v2060_v18 }
0x16b5   :  { %v2064_v34 = vpop.permute.xlu0 %2063 }
0x16b6   :  { %3102 = vmatpush3.msra.mxu1 %v2064_v34 }
0x16b7   :  { %3113 = vmatprep.subr.mxu1 %v3383_v13 }
0x16bc   :  { %v3344_v35 = vpop.eup %3343 }
0x16bd   :  { %v2062_v17 = vmul.f32 %v3344_v35, %v3342_v10  ;;  %v2789_v10 = vld [vmem:[%s4083_s11 + $0xe0] sm:$0xff] }
0x16be   :  { %v3267_v15 = vpack.c.bf16 %v2791_v14, %v2789_v10 }
0x16bf   :  { %3104 = vmatmul.mubr.msk.f32.vlgmr.msra.gmra.mrb[20].mxu1 %vm277_vm4, %v2062_v17  ;;  %v2775_v17 = vld [vmem:[%s4081_s9 + $0x1] ss:$0 sm:$0xff] }
0x16c0   :  { %3114 = vmatpush3.xpose.msk.msra.mxu1 %vm200_vm2, %v1975_v57  ;;  %3115 = vmatprep.mubr.msk.f32.mxu1 %vm3382_vm1, %v3383_v13  ;;  %v2779_v57 = vld [vmem:[%s4083_s11 + $0x90] sm:$0xff] }
0x16c1   :  { %3250 = vmatprep.subr.bf16.mxu1 %v3381_v12  ;;  %v3255_v58 = vpack.c.bf16 %v2779_v57, %v2777_v56 }
0x16c3   :  { %3116 = vmatmul.mubr.msk.f32.vlgmr.msra.gmra.mrb[22].mxu1 %vm200_vm2, %v2214_v38 }
0x16c4   :  { %3127 = vmatprep.mubr.msk.f32.mxu1 %vm3382_vm1, %v3383_v13 }
0x1792   :  { %v2135_v19 = vpop.f32.mrb[20].mxu1 }
0x1793   :  { %v3105_v20 = vpop.f32.mrb[21].mxu1  ;;  %3111 = vmatmul.mubr.msk.f32.vlgmr.msra.gmra.mrb[26].mxu0 %vm200_vm2, %v2135_v19  ;;  %v2776_v19 = vld [vmem:[%s4082_s10 + $0x1] ss:$0 sm:$0xff] }
0x1794   :  { %3119 = vmatpush3.msra.mxu0 %v2064_v34  ;;  %3120 = vmatprep.mubr.msk.f32.mxu0 %vm3382_vm1, %v3383_v13 }
0x1796   :  { %v2283_v22 = vpop.f32.mrb[22].mxu1 }
0x1797   :  { %v2287_v23 = vmul.f32 0.25, %v2283_v22  ;;  %v3117_v24 = vpop.f32.mrb[23].mxu1 }
0x1798   :  { %v2796_v24 = vld [vmem:[%s4084_s12 + $0x88] sm:$0xff] }
0x1799   :  { %v2288_v25 = vadd.f32 %v2287_v23, %v3567_v52  ;;  %v3251_v52 = vpack.c.bf16 %v2756_v32, %v2755_v31  ;;  %v2795_v23 = vld [vmem:[%s4084_s12 + $0x80] sm:$0xff]  ;;  %v2801_v31 = vld [vmem:[%s4084_s12 + $0xb0] sm:$0xff]  ;;  %v2802_v32 = vld [vmem:[%s4084_s12 + $0xb8] sm:$0xff] }
0x179b   :  { %v2289_v26 = vsel %vm277_vm4, %v2288_v25, -inf  ;;  %3252 = vmatpush3.bf16.msra.mxu1 %v3251_v52  ;;  %v3279_v52 = vpack.c.bf16 %v2802_v32, %v2801_v31 }
0x179c   :  { %2290 = vmax.xlane.f32.xlu1 %v2289_v26  ;;  %3269 = vmatprep.subr.bf16.mxu1 %v3381_v12  ;;  %v2797_v26 = vld [vmem:[%s4084_s12 + $0x90] sm:$0xff] }
0x1829   :  { %v2291_v27 = vpop.xlane.xlu1 %2290 }
0x182a   :  { %v2292_v28 = vsub.f32 %v2288_v25, %v2291_v27  ;;  %v3270_v25 = vpack.c.bf16 %v2796_v24, %v2795_v23  ;;  %v2798_v27 = vld [vmem:[%s4084_s12 + $0x98] sm:$0xff] }
0x182c   :  { %v2293_v0 = vmul.f32 1.442695, %v2292_v28  ;;  %v3273_v28 = vpack.c.bf16 %v2798_v27, %v2797_v26 }
0x182e   :  { %3345 = vpow2.f32 %v2293_v0  ;;  %v2799_v0 = vld [vmem:[%s4084_s12 + $0xa0] sm:$0xff] }
0x1838   :  { %v3346_v29 = vpop.eup %3345 }
0x1839   :  { %v2295_v30 = vsel %vm277_vm4, %v3346_v29, 0.0 }
0x183a   :  { %2296 = vadd.xlane.f32.xlu0 %v2295_v30 }
0x1866   :  { %v2208_v33 = vpop.f32.mrb[26].mxu0 }
0x1867   :  { %v2212_v36 = vadd.f32 %v2208_v33, %v1969_v63  ;;  %v3112_v37 = vpop.f32.mrb[27].mxu0  ;;  %v2783_v63 = vld [vmem:[%s4083_s11 + $0xb0] sm:$0xff]  ;;  %v2803_v33 = vld [vmem:[%s4084_s12 + $0xc0] sm:$0xff] }
0x1868   :  { %v3259_v1 = vpack.c.bf16 %v2783_v63, %v2781_v62 }
0x18c7   :  { %v2297_v40 = vpop.xlane.xlu0 %2296 }
0x18c8   :  { %3347 = vrcp.f32 %v2297_v40  ;;  %v2805_v40 = vld [vmem:[%s4084_s12 + $0xd0] sm:$0xff] }
0x18d2   :  { %v3348_v41 = vpop.eup %3347 }
0x18d3   :  { %v2299_v42 = vmul.f32 %v3348_v41, %v3346_v29  ;;  %v2800_v29 = vld [vmem:[%s4084_s12 + $0xa8] sm:$0xff]  ;;  %v2806_v41 = vld [vmem:[%s4084_s12 + $0xd8] sm:$0xff] }
0x18d4   :  { %v3276_v30 = vpack.c.bf16 %v2800_v29, %v2799_v0 }
0x18d5   :  { %3121 = vmatmul.mubr.msk.f32.vlgmr.msra.gmra.mrb[28].mxu0 %vm277_vm4, %v2299_v42  ;;  %v3285_v42 = vpack.c.bf16 %v2806_v41, %v2805_v40 }
0x18d6   :  { %2563 = vmatprep.mubr.f32.mxu0 %v3383_v13 }
0x19a8   :  { %v2369_v44 = vpop.f32.mrb[28].mxu0 }
0x19a9   :  { %v3122_v45 = vpop.f32.mrb[29].mxu0  ;;  %3128 = vmatmul.mubr.msk.f32.vlgmr.msra.gmra.mrb[24].mxu1 %vm200_vm2, %v2369_v44  ;;  %v2807_v44 = vld [vmem:[%s4084_s12 + $0xe0] sm:$0xff] }
0x19aa   :  { %3162 = vmatprep.mubr.msk.f32.mxu1 %vm3382_vm1, %v3383_v13  ;;  %v2778_v13 = vld [vmem:[%s4083_s11 + $0x88] sm:$0xff]  ;;  %3271 = vmatpush3.bf16.msra.mxu1 %v3270_v25 }
0x19ab   :  { %3272 = vmatprep.subr.bf16.mxu1 %v3381_v12  ;;  %v2808_v45 = vld [vmem:[%s4084_s12 + $0xe8] sm:$0xff] }
0x19ae   :  { %3274 = vmatpush3.bf16.msra.mxu1 %v3273_v28 }
0x19af   :  { %3275 = vmatprep.subr.bf16.mxu1 %v3381_v12 }
0x19b2   :  { %3277 = vmatpush3.bf16.msra.mxu1 %v3276_v30 }
0x19b3   :  { %3278 = vmatprep.subr.bf16.mxu1 %v3381_v12 }
0x19b6   :  { %3280 = vmatpush3.bf16.msra.mxu1 %v3279_v52 }
0x19b7   :  { %3281 = vmatprep.subr.bf16.mxu1 %v3381_v12 }
0x1a7c   :  { %v2442_v46 = vpop.f32.mrb[24].mxu1 }
0x1a7d   :  { %v2446_v47 = vadd.f32 %v2442_v46, %v2212_v36  ;;  %v3129_v48 = vpop.f32.mrb[25].mxu1  ;;  %v2804_v36 = vld [vmem:[%s4084_s12 + $0xc8] sm:$0xff]  ;;  %v3288_v46 = vpack.c.bf16 %v2808_v45, %v2807_v44 }
0x1a7e   :  { %v3282_v37 = vpack.c.bf16 %v2804_v36, %v2803_v33  ;;  %v2810_v48 = vld [vmem:[%s4084_s12 + $0xf8] sm:$0xff] }
0x1a7f   :  { %v3934_v21 = vadd.f32 %v2446_v47, %v3779_v39  ;;  %v2780_v39 = vld [vmem:[%s4083_s11 + $0x98] sm:$0xff]  ;;  %v2809_v47 = vld [vmem:[%s4084_s12 + $0xf0] sm:$0xff] }
0x1a80   :  { %v3253_v43 = vpack.c.bf16 %v2780_v39, %v2778_v13  ;;  %3283 = vmatpush3.bf16.msra.mxu1 %v3282_v37 }
0x1a81   :  { %v2452_v49 = vsel %vm63_vm0, %v3934_v21, 0.0  ;;  %3284 = vmatprep.subr.bf16.mxu1 %v3381_v12 }
0x1a82   :  { %2453 = vadd.xlane.f32.xlu0 %v2452_v49  ;;  %3254 = vmatprep.subr.bf16.mxu0 %v3253_v43  ;;  %v3291_v49 = vpack.c.bf16 %v2810_v48, %v2809_v47 }
0x1a83   :  { %3256 = vmatpush1.bf16.msra.mxu0 %v3255_v58 }
0x1a84   :  { %3258 = vmatprep.subr.bf16.mxu0 %v3257_v61  ;;  %3286 = vmatpush3.bf16.msra.mxu1 %v3285_v42 }
0x1a85   :  { %3287 = vmatprep.subr.bf16.mxu1 %v3381_v12 }
0x1a87   :  { %3260 = vmatpush1.bf16.msra.mxu0 %v3259_v1 }
0x1a88   :  { %3262 = vmatprep.subr.bf16.mxu0 %v3261_v4  ;;  %3289 = vmatpush3.bf16.msra.mxu1 %v3288_v46 }
0x1a89   :  { %3290 = vmatprep.subr.bf16.mxu1 %v3381_v12 }
0x1a8b   :  { %3264 = vmatpush1.bf16.msra.mxu0 %v3263_v7 }
0x1a8c   :  { %3266 = vmatprep.subr.bf16.mxu0 %v3265_v11  ;;  %3292 = vmatpush3.bf16.msra.mxu1 %v3291_v49 }
0x1a8f   :  { %3268 = vmatpush1.bf16.msra.mxu0 %v3267_v15 }
0x1b0f   :  { %v2454_v50 = vpop.xlane.xlu0 %2453 }
0x1b10   :  { %v2455_v51 = vmul.f32 0.015625, %v2454_v50 }
0x1b12   :  { %v2456_v53 = vsub.f32 %v3934_v21, %v2455_v51 }
0x1b14   :  { %v2457_v54 = vmul.f32 %v2456_v53, %v2456_v53 }
0x1b16   :  { %v2458_v55 = vsel %vm63_vm0, %v2457_v54, 0.0 }
0x1b17   :  { %2459 = vadd.xlane.f32.xlu1 %v2458_v55 }
0x1ba4   :  { %v2460_v16 = vpop.xlane.xlu1 %2459 }
0x1ba5   :  { %v2461_v18 = vmul.f32 0.015625, %v2460_v16 }
0x1ba7   :  { %v2462_v34 = vadd.f32 1e-05, %v2461_v18 }
0x1ba9   :  { %3349 = vrsqrt.f32 %v2462_v34 }
0x1bb3   :  { %v3350_v35 = vpop.eup %3349 }
0x1bb4   :  { %v2464_v38 = vmul.f32 %v3350_v35, %v2456_v53 }
0x1bb6   :  { %v2471_v20 = vmul.f32 %v2775_v17, %v2464_v38 }
0x1bb8   :  { %v2478_v22 = vadd.f32 %v2776_v19, %v2471_v20 }
0x1bba   :  { %2793 = vmatmul.mubr.msk.f32.vlgmr.msra.gmra.mrb[30].mxu0 %vm63_vm0, %v2478_v22 }
0x1c8d   :  { %v2565_v50 = vpop.f32.mrb[30].mxu0 }
0x1c8e   :  { %v2794_v51 = vmul.f32 -1.442695, %v2565_v50  ;;  %v2567_v53 = vpop.f32.mrb[31].mxu0 }
0x1c90   :  { %3351 = vpow2.f32 %v2794_v51 }
0x1c9a   :  { %v3352_v54 = vpop.eup %3351 }
0x1c9b   :  { %v2573_v55 = vadd.f32 1.0, %v3352_v54 }
0x1c9d   :  { %3353 = vrcp.f32 %v2573_v55 }
0x1ca7   :  { %v3354_v13 = vpop.eup %3353 }
0x1ca8   :  { %v2576_v39 = vmul.f32 %v3354_v13, %v2565_v50 }
0x1caa   :  { %v2577_v12 = vmul.f32 %v2576_v39, %v2567_v53 }
0x1cac   :  { %3163 = vmatmul.mubr.f32.vlgmr.msra.gmra.mrb[26].mxu1 %v2577_v12 }
0x1d7f   :  { %v2661_v43 = vpop.f32.mrb[26].mxu1 }
0x1d80   :  { %v2665_v56 = vadd.f32 %v2661_v43, %v3934_v21  ;;  %v3164_v57 = vpop.f32.mrb[27].mxu1  ;;  %v2811_v21 = vld [vmem:[%s4085_s13] ss:$0 sm:$0xff] }
0x1d82   :  { %v2668_v58 = vsel %vm63_vm0, %v2665_v56, 0.0 }
0x1d83   :  { %2669 = vadd.xlane.f32.xlu0 %v2668_v58 }
0x1e10   :  { %v2670_v59 = vpop.xlane.xlu0 %2669 }
0x1e11   :  { %v2671_v60 = vmul.f32 0.015625, %v2670_v59 }
0x1e13   :  { %v2672_v61 = vsub.f32 %v2665_v56, %v2671_v60 }
0x1e15   :  { %v2673_v62 = vmul.f32 %v2672_v61, %v2672_v61 }
0x1e17   :  { %v2674_v63 = vsel %vm63_vm0, %v2673_v62, 0.0 }
0x1e18   :  { %2675 = vadd.xlane.f32.xlu1 %v2674_v63 }
0x1ea5   :  { %v2676_v1 = vpop.xlane.xlu1 %2675 }
0x1ea6   :  { %v2677_v2 = vmul.f32 0.015625, %v2676_v1 }
0x1ea8   :  { %v2678_v3 = vadd.f32 1e-05, %v2677_v2 }
0x1eaa   :  { %3355 = vrsqrt.f32 %v2678_v3 }
0x1eb4   :  { %v3356_v4 = vpop.eup %3355 }
0x1eb5   :  { %v2680_v5 = vmul.f32 %v3356_v4, %v2672_v61 }
0x1eb7   :  { %v2687_v7 = vmul.f32 %v2811_v21, %v2680_v5 }
0x1eb9   :  { %v2694_v8 = vadd.f32 %v2812_v6, %v2687_v7 }
0x1ebb   :  { %2695 = vst.msk [vmem:[#allocation2] sm:$0xff] %vm63_vm0, %v2694_v8 }
0x1ebc   :  { %3368 = shalt.err (!%p3365_p4)
}
0x1ebd   :  { %s3369_s30 = scalar_lea.hbm %s4087_s15, 128 }
0x1ebe   :  { %p3370_p5 = scmp.ne.s32.totalorder %s4087_s15, %s3369_s30  ;;  %p3373_p6 = scmp.lt.u32.totalorder %s3369_s30, %s4087_s15 }
0x1ec0   :  { %p3375_p7 = pnand %p3373_p6, %p3370_p5 }
0x1ec2   :  { %3378 = shalt.err (!%p3375_p7)
}
0x1ec3   :  { %2705 = dma.vmem_to_hbm [thread:$0]  %s2703_s24, 128, %s4087_s15, [#allocation3]  }
0x1ec4   :  { %3379 = dma.done.wait [#allocation3], 128  }
0x1ec5   :  { %3380 = vsyncadd [#allocation3], 4294967168 }
0x1ec6   :  { %2709 = vsyncpa [#allocation3], 1 }

</bundles_post_ra>
